<compile_context>
chip_gen: v5e
topology: v5e:2x2
jax: 0.10.0
libtpu: 0.0.40
codegen_flags: <defaults>
</compile_context>

<pallas_src>
import numpy as np

import jax
import jax.numpy as jnp
from jax.experimental import pallas as pl
from jax.experimental.pallas import tpu as pltpu

LANE = 128          # TPU lane width; all matmul N dims padded to this
KSIZE = 5           # conv kernel size (both convs)


# ------------------------------ fused kernel ------------------------------- #

def _lenet_kernel(x_ref, m1_ref, s1_ref, b1_ref, m2_ref, s2_ref, b2_ref,
                  w1_ref, bf1_ref, w2_ref, bf2_ref, w3_ref, bf3_ref,
                  out_ref,
                  xw1_ref, p1_ref, xw2_ref, p2_ref, fin_ref):
    """One batch tile (TB images); everything VMEM-resident.

    x_ref   : (TB, 32, 128) f32   rows=height, cols=(w*3+c), zero-padded to 128
    m1/m2   : (640, 256)    bf16  conv + width-pool matrices (parities along N)
    s1/s2   : (32,28)/(16,10) bf16 stacked 0/1 row-pool selection (even | odd)
    b1/b2   : (1, 128)      f32   conv biases tiled to the activation layout
    w1      : (640, 128)    bf16  fc1 weights (NCHW flatten folded in)
    w2/w3   : (128, 128)    bf16  fc2/fc3 weights (transposed, zero-padded)
    bf1..3  : (1, 128)      f32   fc biases (zero-padded)
    out_ref : (1, TB, 128)  f32   logits (cols 10..127 are zero)
    xw1/xw2 : (TB, 28/10, 640) bf16 scratch: height-im2col staging
    p1/p2   : (TB, 16/8, 128)  f32  scratch: pooled conv activations
    fin     : (TB, 640)        bf16 scratch: flattened fc1 input
    """
    f32, bf16 = jnp.float32, jnp.bfloat16
    TB = x_ref.shape[0]
    OH1 = xw1_ref.shape[1]            # 28
    OH2 = xw2_ref.shape[1]            # 10
    H1 = s1_ref.shape[0] // 2         # 16 (rows 14..15 are padding)
    H2 = s2_ref.shape[0] // 2         # 8  (rows 5..7 are padding)
    PH2 = fin_ref.shape[1] // LANE    # 5

    for t in range(TB):               # TB is small & static -> fully unrolled
        # -- conv1: height-im2col copy + ONE bf16 matmul for both width parities
        for kh in range(KSIZE):
            xw1_ref[t, :, kh * LANE:(kh + 1) * LANE] = \
                x_ref[t, kh:kh + OH1, :].astype(bf16)
        y1 = jnp.dot(xw1_ref[t, :, :], m1_ref[...],
                     preferred_element_type=f32)                      # (28, 256)
        cm1 = jnp.maximum(y1[:, :LANE], y1[:, LANE:]).astype(bf16)    # width pool
        rp1 = jnp.dot(s1_ref[...], cm1, preferred_element_type=f32)   # (32, 128)
        pooled1 = jnp.maximum(rp1[:H1, :], rp1[H1:, :])               # height pool
        p1_ref[t, :, :] = jnp.maximum(pooled1 + b1_ref[...], 0.0)     # bias + ReLU

        # -- conv2: same structure on the pooled conv1 activation ------------
        for kh in range(KSIZE):
            xw2_ref[t, :, kh * LANE:(kh + 1) * LANE] = \
                p1_ref[t, kh:kh + OH2, :].astype(bf16)
        y2 = jnp.dot(xw2_ref[t, :, :], m2_ref[...],
                     preferred_element_type=f32)                      # (10, 256)
        cm2 = jnp.maximum(y2[:, :LANE], y2[:, LANE:]).astype(bf16)
        rp2 = jnp.dot(s2_ref[...], cm2, preferred_element_type=f32)   # (16, 128)
        pooled2 = jnp.maximum(rp2[:H2, :], rp2[H2:, :])
        p2_ref[t, :, :] = jnp.maximum(pooled2 + b2_ref[...], 0.0)

        # -- flatten: lane-concat the 5 real rows of p2 into one 640-wide row
        #    (PyTorch's (c,h,w) flatten order is folded into w1's rows)
        for h in range(PH2):
            fin_ref[t:t + 1, h * LANE:(h + 1) * LANE] = \
                p2_ref[t, h:h + 1, :].astype(bf16)

    # -- fc1 / fc2 / fc3: one lane-dense matmul each for the whole batch tile -
    h1 = jnp.dot(fin_ref[...], w1_ref[...], preferred_element_type=f32) + bf1_ref[...]
    h1 = jnp.maximum(h1, 0.0).astype(bf16)                            # (TB, 128)
    h2 = jnp.dot(h1, w2_ref[...], preferred_element_type=f32) + bf2_ref[...]
    h2 = jnp.maximum(h2, 0.0).astype(bf16)                            # (TB, 128)
    out_ref[0, :, :] = (jnp.dot(h2, w3_ref[...], preferred_element_type=f32)
                        + bf3_ref[...])                               # (TB, 128)


# ----------------------- one-time parameter preparation --------------------- #

def prepare_params(params):
    """Fold im2col banding, width-pool parity stacking, lane padding to 128,
    bias tiling and the NCHW flatten into the weights (runs once at init)."""
    cw1 = np.asarray(params["cw1"], np.float32)   # (6, 3, 5, 5)
    cb1 = np.asarray(params["cb1"], np.float32)
    cw2 = np.asarray(params["cw2"], np.float32)   # (16, 6, 5, 5)
    cb2 = np.asarray(params["cb2"], np.float32)
    fw1 = np.asarray(params["fw1"], np.float32)   # (120, 400)  PyTorch (out, in)
    fb1 = np.asarray(params["fb1"], np.float32)
    fw2 = np.asarray(params["fw2"], np.float32)   # (84, 120)
    fb2 = np.asarray(params["fb2"], np.float32)
    fw3 = np.asarray(params["fw3"], np.float32)   # (10, 84)
    fb3 = np.asarray(params["fb3"], np.float32)

    h_in = 32                                               # forced by fc1 = 16*5*5
    oh1, ph1 = h_in - KSIZE + 1, (h_in - KSIZE + 1) // 2    # 28, 14
    oh2, ph2 = ph1 - KSIZE + 1, (ph1 - KSIZE + 1) // 2      # 10, 5
    oc2 = cw2.shape[0]                                      # 16

    def conv_pool_mat(w, w_in):
        """(5*128, 256) banded matrix.
        row = kh*128 + iw*Cin + c  (column layout of one height window)
        col = cp*128 + pw*OC + oc  (width-pool parity cp stacked along lanes)."""
        oc_n, c_n, kh_n, kw_n = w.shape
        pw_n = (w_in - kw_n + 1) // 2
        wt = np.transpose(w, (2, 3, 1, 0))                  # (KH, KW, C, OC)
        m = np.zeros((kh_n * LANE, 2 * LANE), np.float32)
        for kh in range(kh_n):
            for cp in range(2):
                for pw in range(pw_n):
                    for kw in range(kw_n):
                        iw = 2 * pw + cp + kw
                        m[kh * LANE + iw * c_n: kh * LANE + (iw + 1) * c_n,
                          cp * LANE + pw * oc_n: cp * LANE + (pw + 1) * oc_n] = wt[kh, kw]
        return m

    def rowpool_mat(oh, half_rows):
        """(2*half_rows, oh): top half selects even rows, bottom half odd rows."""
        ph = oh // 2
        s = np.zeros((2 * half_rows, oh), np.float32)
        s[np.arange(ph), 2 * np.arange(ph)] = 1.0
        s[half_rows + np.arange(ph), 2 * np.arange(ph) + 1] = 1.0
        return s

    def lane_pad_bias(b, reps):
        v = np.zeros((1, LANE), np.float32)
        t = np.tile(b, reps)
        v[0, :t.size] = t
        return v

    m1 = conv_pool_mat(cw1, h_in)       # (640, 256)
    m2 = conv_pool_mat(cw2, ph1)        # (640, 256)
    s1 = rowpool_mat(oh1, 16)           # (32, 28)
    s2 = rowpool_mat(oh2, 8)            # (16, 10)
    b1 = lane_pad_bias(cb1, ph1)        # (1, 128), 84 used
    b2 = lane_pad_bias(cb2, ph2)        # (1, 128), 80 used

    # fc1: our flattened layout is [h*128 + w*16 + c]; PyTorch flatten is (c, h, w).
    w1 = np.zeros((ph2 * LANE, LANE), np.float32)
    f1 = fw1.reshape(-1, oc2, ph2, ph2)                     # (120, c, h, w)
    for h in range(ph2):
        for w_ in range(ph2):
            w1[h * LANE + w_ * oc2: h * LANE + (w_ + 1) * oc2, :f1.shape[0]] = \
                f1[:, :, h, w_].T
    bf1 = np.zeros((1, LANE), np.float32); bf1[0, :fb1.size] = fb1

    w2 = np.zeros((LANE, LANE), np.float32); w2[:fw2.shape[1], :fw2.shape[0]] = fw2.T
    bf2 = np.zeros((1, LANE), np.float32); bf2[0, :fb2.size] = fb2
    w3 = np.zeros((LANE, LANE), np.float32); w3[:fw3.shape[1], :fw3.shape[0]] = fw3.T
    bf3 = np.zeros((1, LANE), np.float32); bf3[0, :fb3.size] = fb3

    bf16 = jnp.bfloat16
    return dict(
        m1=jnp.asarray(m1, bf16), s1=jnp.asarray(s1, bf16), b1=jnp.asarray(b1),
        m2=jnp.asarray(m2, bf16), s2=jnp.asarray(s2, bf16), b2=jnp.asarray(b2),
        w1=jnp.asarray(w1, bf16), bf1=jnp.asarray(bf1),
        w2=jnp.asarray(w2, bf16), bf2=jnp.asarray(bf2),
        w3=jnp.asarray(w3, bf16), bf3=jnp.asarray(bf3))


# -------------------------------- forward ----------------------------------- #

def _const_spec(shape):
    nd = len(shape)
    return pl.BlockSpec(shape, lambda i, _nd=nd: (0,) * _nd)


def net_forward(x_nchw, prep, batch_tile=None):
    B, C, H, W = x_nchw.shape
    assert (C, H, W) == (3, 32, 32), "fc1 = 16*5*5 forces 3x32x32 inputs"

    # Single per-call input relayout: NCHW -> (B, H, W*C), zero-pad lanes to 128.
    x3 = jnp.transpose(x_nchw, (0, 2, 3, 1)).reshape(B, H, W * C)
    x3 = jnp.pad(x3.astype(jnp.float32), ((0, 0), (0, 0), (0, LANE - W * C)))

    # Batch tiling: small B -> one image per grid step (both TCs used on v7x);
    # larger B -> tiles of 8 so input/output DMA double-buffers under compute.
    if batch_tile is None:
        batch_tile = 1 if B <= 4 else 8
    tb = max(1, min(batch_tile, B))
    b_pad = ((B + tb - 1) // tb) * tb
    if b_pad != B:
        x3 = jnp.pad(x3, ((0, b_pad - B), (0, 0), (0, 0)))
    n_tiles = b_pad // tb

    oh1 = H - KSIZE + 1                 # 28
    oh2 = oh1 // 2 - KSIZE + 1          # 10
    ph2 = oh2 // 2                      # 5

    weights = [prep[k] for k in ("m1", "s1", "b1", "m2", "s2", "b2",
                                 "w1", "bf1", "w2", "bf2", "w3", "bf3")]

    out = pl.pallas_call(
        _lenet_kernel,
        out_shape=jax.ShapeDtypeStruct((n_tiles, tb, LANE), jnp.float32),
        grid=(n_tiles,),
        in_specs=[pl.BlockSpec((tb, H, LANE), lambda i: (i, 0, 0))]
                 + [_const_spec(w.shape) for w in weights],
        out_specs=pl.BlockSpec((1, tb, LANE), lambda i: (i, 0, 0)),
        scratch_shapes=[
            pltpu.VMEM((tb, oh1, KSIZE * LANE), jnp.bfloat16),  # conv1 height-im2col
            pltpu.VMEM((tb, 16, LANE), jnp.float32),            # pooled conv1 (+2 pad rows)
            pltpu.VMEM((tb, oh2, KSIZE * LANE), jnp.bfloat16),  # conv2 height-im2col
            pltpu.VMEM((tb, 8, LANE), jnp.float32),             # pooled conv2 (+3 pad rows)
            pltpu.VMEM((tb, ph2 * LANE), jnp.bfloat16),         # flattened fc1 input
        ],
        compiler_params=pltpu.CompilerParams(
            dimension_semantics=("parallel",)),
    )(x3, *weights)

    return out.reshape(b_pad, LANE)[:B, :10]


# ------------------------------ reference ----------------------------------- #

def reference_forward(x, params):
    """Straightforward pure-JAX implementation of the PyTorch module."""
    def conv_relu(y, w, b):
        y = jax.lax.conv_general_dilated(
            y, w, window_strides=(1, 1), padding="VALID",
            dimension_numbers=("NCHW", "OIHW", "NCHW"))
        return jax.nn.relu(y + b[None, :, None, None])

    def pool(y):
        return jax.lax.reduce_window(y, -jnp.inf, jax.lax.max,
                                     (1, 1, 2, 2), (1, 1, 2, 2), "VALID")

    y = pool(conv_relu(x, params["cw1"], params["cb1"]))
    y = pool(conv_relu(y, params["cw2"], params["cb2"]))
    y = y.reshape(y.shape[0], -1)
    y = jax.nn.relu(y @ params["fw1"].T + params["fb1"])
    y = jax.nn.relu(y @ params["fw2"].T + params["fb2"])
    return y @ params["fw3"].T + params["fb3"]


# ------------------------------- params init -------------------------------- #

def init_params(key):
    """Deterministic init mimicking PyTorch defaults: U(-1/sqrt(fan_in), +)."""
    ks = jax.random.split(key, 10)

    def u(k, shape, fan_in):
        bound = 1.0 / jnp.sqrt(jnp.float32(fan_in))
        return jax.random.uniform(k, shape, jnp.float32, -bound, bound)

    return {
        "cw1": u(ks[0], (6, 3, 5, 5), 3 * 5 * 5),
        "cb1": u(ks[1], (6,), 3 * 5 * 5),
        "cw2": u(ks[2], (16, 6, 5, 5), 6 * 5 * 5),
        "cb2": u(ks[3], (16,), 6 * 5 * 5),
        "fw1": u(ks[4], (120, 400), 400),   # PyTorch Linear layout (out, in)
        "fb1": u(ks[5], (120,), 400),
        "fw2": u(ks[6], (84, 120), 120),
        "fb2": u(ks[7], (84,), 120),
        "fw3": u(ks[8], (10, 84), 84),
        "fb3": u(ks[9], (10,), 84),
    }


if __name__ == "__main__":
    # FC-layer sizes force 3x32x32 inputs (CIFAR-10); batch = 2.
    key = jax.random.PRNGKey(0)
    kx, kp = jax.random.split(key)
    x = jax.random.normal(kx, (2, 3, 32, 32), jnp.float32)
    params = init_params(kp)
    prep = prepare_params(params)          # one-time weight layout work

    fwd = jax.jit(net_forward)
    out = fwd(x, prep)
    jax.block_until_ready(out)
    assert out.shape == (2, 10) and out.dtype == jnp.float32

    # Sanity check against a plain-XLA reference (loose tol: bf16 MXU operands).
    ref = reference_forward(x, params)
    np.testing.assert_allclose(np.asarray(out), np.asarray(ref),
                               rtol=5e-2, atol=5e-2)
    print("KERNEL_OK")
</pallas_src>

<mosaic_0001>
module attributes {stable_mosaic.version = 11 : i64} {
  func.func @_lenet_kernel(%arg0: i32, %arg1: memref<1x32x128xf32, #tpu.memory_space<vmem>>, %arg2: memref<640x256xbf16, #tpu.memory_space<vmem>>, %arg3: memref<32x28xbf16, #tpu.memory_space<vmem>>, %arg4: memref<1x128xf32, #tpu.memory_space<vmem>>, %arg5: memref<640x256xbf16, #tpu.memory_space<vmem>>, %arg6: memref<16x10xbf16, #tpu.memory_space<vmem>>, %arg7: memref<1x128xf32, #tpu.memory_space<vmem>>, %arg8: memref<640x128xbf16, #tpu.memory_space<vmem>>, %arg9: memref<1x128xf32, #tpu.memory_space<vmem>>, %arg10: memref<128x128xbf16, #tpu.memory_space<vmem>>, %arg11: memref<1x128xf32, #tpu.memory_space<vmem>>, %arg12: memref<128x128xbf16, #tpu.memory_space<vmem>>, %arg13: memref<1x128xf32, #tpu.memory_space<vmem>>, %arg14: memref<1x1x128xf32, #tpu.memory_space<vmem>>, %arg15: memref<1x28x640xbf16, #tpu.memory_space<vmem>>, %arg16: memref<1x16x128xf32, #tpu.memory_space<vmem>>, %arg17: memref<1x10x640xbf16, #tpu.memory_space<vmem>>, %arg18: memref<1x8x128xf32, #tpu.memory_space<vmem>>, %arg19: memref<1x640xbf16, #tpu.memory_space<vmem>>) attributes {dimension_semantics = [#tpu.dimension_semantics<parallel>], iteration_bounds = array<i64: 2>, scalar_prefetch = 0 : i64, scratch_operands = 5 : i64, tpu.core_type = #tpu.core_type<tc>, window_params = [{transform_indices = @transform_0, window_bounds = array<i64: 1, 32, 128>}, {pipeline_mode = #tpu.pipeline_mode<synchronous>, transform_indices = @transform_1, window_bounds = array<i64: 640, 256>}, {pipeline_mode = #tpu.pipeline_mode<synchronous>, transform_indices = @transform_2, window_bounds = array<i64: 32, 28>}, {pipeline_mode = #tpu.pipeline_mode<synchronous>, transform_indices = @transform_3, window_bounds = array<i64: 1, 128>}, {pipeline_mode = #tpu.pipeline_mode<synchronous>, transform_indices = @transform_4, window_bounds = array<i64: 640, 256>}, {pipeline_mode = #tpu.pipeline_mode<synchronous>, transform_indices = @transform_5, window_bounds = array<i64: 16, 10>}, {pipeline_mode = #tpu.pipeline_mode<synchronous>, transform_indices = @transform_6, window_bounds = array<i64: 1, 128>}, {pipeline_mode = #tpu.pipeline_mode<synchronous>, transform_indices = @transform_7, window_bounds = array<i64: 640, 128>}, {pipeline_mode = #tpu.pipeline_mode<synchronous>, transform_indices = @transform_8, window_bounds = array<i64: 1, 128>}, {pipeline_mode = #tpu.pipeline_mode<synchronous>, transform_indices = @transform_9, window_bounds = array<i64: 128, 128>}, {pipeline_mode = #tpu.pipeline_mode<synchronous>, transform_indices = @transform_10, window_bounds = array<i64: 1, 128>}, {pipeline_mode = #tpu.pipeline_mode<synchronous>, transform_indices = @transform_11, window_bounds = array<i64: 128, 128>}, {pipeline_mode = #tpu.pipeline_mode<synchronous>, transform_indices = @transform_12, window_bounds = array<i64: 1, 128>}, {transform_indices = @transform_13, window_bounds = array<i64: 1, 1, 128>}]} {
    %c0 = arith.constant 0 : index
    %c0_0 = arith.constant 0 : index
    %c0_1 = arith.constant 0 : index
    %0 = vector.load %arg1[%c0, %c0_0, %c0_1] : memref<1x32x128xf32, #tpu.memory_space<vmem>>, vector<1x28x128xf32>
    %1 = vector.shape_cast %0 : vector<1x28x128xf32> to vector<28x128xf32>
    %2 = arith.truncf %1 : vector<28x128xf32> to vector<28x128xbf16>
    %c0_2 = arith.constant 0 : index
    %c0_3 = arith.constant 0 : index
    %c0_4 = arith.constant 0 : index
    %3 = vector.load %arg15[%c0_2, %c0_3, %c0_4] : memref<1x28x640xbf16, #tpu.memory_space<vmem>>, vector<1x28x128xbf16>
    %4 = vector.shape_cast %3 : vector<1x28x128xbf16> to vector<28x128xbf16>
    %5 = vector.shape_cast %2 : vector<28x128xbf16> to vector<1x28x128xbf16>
    tpu.vector_store %arg15[%c0_2, %c0_3, %c0_4], %5 {strides = array<i32>} : memref<1x28x640xbf16, #tpu.memory_space<vmem>>, vector<1x28x128xbf16>,
    %c0_5 = arith.constant 0 : index
    %c1 = arith.constant 1 : index
    %c0_6 = arith.constant 0 : index
    %6 = vector.load %arg1[%c0_5, %c1, %c0_6] : memref<1x32x128xf32, #tpu.memory_space<vmem>>, vector<1x28x128xf32>
    %7 = vector.shape_cast %6 : vector<1x28x128xf32> to vector<28x128xf32>
    %8 = arith.truncf %7 : vector<28x128xf32> to vector<28x128xbf16>
    %c0_7 = arith.constant 0 : index
    %c0_8 = arith.constant 0 : index
    %c128 = arith.constant 128 : index
    %9 = vector.load %arg15[%c0_7, %c0_8, %c128] : memref<1x28x640xbf16, #tpu.memory_space<vmem>>, vector<1x28x128xbf16>
    %10 = vector.shape_cast %9 : vector<1x28x128xbf16> to vector<28x128xbf16>
    %11 = vector.shape_cast %8 : vector<28x128xbf16> to vector<1x28x128xbf16>
    tpu.vector_store %arg15[%c0_7, %c0_8, %c128], %11 {strides = array<i32>} : memref<1x28x640xbf16, #tpu.memory_space<vmem>>, vector<1x28x128xbf16>,
    %c0_9 = arith.constant 0 : index
    %c2 = arith.constant 2 : index
    %c0_10 = arith.constant 0 : index
    %12 = vector.load %arg1[%c0_9, %c2, %c0_10] : memref<1x32x128xf32, #tpu.memory_space<vmem>>, vector<1x28x128xf32>
    %13 = vector.shape_cast %12 : vector<1x28x128xf32> to vector<28x128xf32>
    %14 = arith.truncf %13 : vector<28x128xf32> to vector<28x128xbf16>
    %c0_11 = arith.constant 0 : index
    %c0_12 = arith.constant 0 : index
    %c256 = arith.constant 256 : index
    %15 = vector.load %arg15[%c0_11, %c0_12, %c256] : memref<1x28x640xbf16, #tpu.memory_space<vmem>>, vector<1x28x128xbf16>
    %16 = vector.shape_cast %15 : vector<1x28x128xbf16> to vector<28x128xbf16>
    %17 = vector.shape_cast %14 : vector<28x128xbf16> to vector<1x28x128xbf16>
    tpu.vector_store %arg15[%c0_11, %c0_12, %c256], %17 {strides = array<i32>} : memref<1x28x640xbf16, #tpu.memory_space<vmem>>, vector<1x28x128xbf16>,
    %c0_13 = arith.constant 0 : index
    %c3 = arith.constant 3 : index
    %c0_14 = arith.constant 0 : index
    %18 = vector.load %arg1[%c0_13, %c3, %c0_14] : memref<1x32x128xf32, #tpu.memory_space<vmem>>, vector<1x28x128xf32>
    %19 = vector.shape_cast %18 : vector<1x28x128xf32> to vector<28x128xf32>
    %20 = arith.truncf %19 : vector<28x128xf32> to vector<28x128xbf16>
    %c0_15 = arith.constant 0 : index
    %c0_16 = arith.constant 0 : index
    %c384 = arith.constant 384 : index
    %21 = vector.load %arg15[%c0_15, %c0_16, %c384] : memref<1x28x640xbf16, #tpu.memory_space<vmem>>, vector<1x28x128xbf16>
    %22 = vector.shape_cast %21 : vector<1x28x128xbf16> to vector<28x128xbf16>
    %23 = vector.shape_cast %20 : vector<28x128xbf16> to vector<1x28x128xbf16>
    tpu.vector_store %arg15[%c0_15, %c0_16, %c384], %23 {strides = array<i32>} : memref<1x28x640xbf16, #tpu.memory_space<vmem>>, vector<1x28x128xbf16>,
    %c0_17 = arith.constant 0 : index
    %c4 = arith.constant 4 : index
    %c0_18 = arith.constant 0 : index
    %24 = vector.load %arg1[%c0_17, %c4, %c0_18] : memref<1x32x128xf32, #tpu.memory_space<vmem>>, vector<1x28x128xf32>
    %25 = vector.shape_cast %24 : vector<1x28x128xf32> to vector<28x128xf32>
    %26 = arith.truncf %25 : vector<28x128xf32> to vector<28x128xbf16>
    %c0_19 = arith.constant 0 : index
    %c0_20 = arith.constant 0 : index
    %c512 = arith.constant 512 : index
    %27 = vector.load %arg15[%c0_19, %c0_20, %c512] : memref<1x28x640xbf16, #tpu.memory_space<vmem>>, vector<1x28x128xbf16>
    %28 = vector.shape_cast %27 : vector<1x28x128xbf16> to vector<28x128xbf16>
    %29 = vector.shape_cast %26 : vector<28x128xbf16> to vector<1x28x128xbf16>
    tpu.vector_store %arg15[%c0_19, %c0_20, %c512], %29 {strides = array<i32>} : memref<1x28x640xbf16, #tpu.memory_space<vmem>>, vector<1x28x128xbf16>,
    %c0_21 = arith.constant 0 : index
    %c0_22 = arith.constant 0 : index
    %c0_23 = arith.constant 0 : index
    %30 = vector.load %arg15[%c0_21, %c0_22, %c0_23] : memref<1x28x640xbf16, #tpu.memory_space<vmem>>, vector<1x28x640xbf16>
    %31 = vector.shape_cast %30 : vector<1x28x640xbf16> to vector<28x640xbf16>
    %c0_24 = arith.constant 0 : index
    %c0_25 = arith.constant 0 : index
    %32 = vector.load %arg2[%c0_24, %c0_25] : memref<640x256xbf16, #tpu.memory_space<vmem>>, vector<640x256xbf16>
    %cst = arith.constant dense<0.000000e+00> : vector<28x256xf32>
    %33 = tpu.matmul %31, %32, %cst {dimension_numbers = #tpu.dot_dimension_numbers<[1], [0], [0], [1], [0, 0, 1, 1], [], []>} : vector<28x640xbf16>, vector<640x256xbf16>, vector<28x256xf32> -> vector<28x256xf32>
    %34 = vector.extract_strided_slice %33 {offsets = [0, 0], sizes = [28, 128], strides = [1, 1]} : vector<28x256xf32> to vector<28x128xf32>
    %35 = vector.extract_strided_slice %33 {offsets = [0, 128], sizes = [28, 128], strides = [1, 1]} : vector<28x256xf32> to vector<28x128xf32>
    %36 = arith.maximumf %34, %35 : vector<28x128xf32>
    %37 = arith.truncf %36 : vector<28x128xf32> to vector<28x128xbf16>
    %c0_26 = arith.constant 0 : index
    %c0_27 = arith.constant 0 : index
    %38 = vector.load %arg3[%c0_26, %c0_27] : memref<32x28xbf16, #tpu.memory_space<vmem>>, vector<32x28xbf16>
    %cst_28 = arith.constant dense<0.000000e+00> : vector<32x128xf32>
    %39 = tpu.matmul %38, %37, %cst_28 {dimension_numbers = #tpu.dot_dimension_numbers<[1], [0], [0], [1], [0, 0, 1, 1], [], []>} : vector<32x28xbf16>, vector<28x128xbf16>, vector<32x128xf32> -> vector<32x128xf32>
    %40 = vector.extract_strided_slice %39 {offsets = [0, 0], sizes = [16, 128], strides = [1, 1]} : vector<32x128xf32> to vector<16x128xf32>
    %41 = vector.extract_strided_slice %39 {offsets = [16, 0], sizes = [16, 128], strides = [1, 1]} : vector<32x128xf32> to vector<16x128xf32>
    %42 = arith.maximumf %40, %41 : vector<16x128xf32>
    %c0_29 = arith.constant 0 : index
    %c0_30 = arith.constant 0 : index
    %43 = vector.load %arg4[%c0_29, %c0_30] : memref<1x128xf32, #tpu.memory_space<vmem>>, vector<1x128xf32>
    %44 = vector.broadcast %43 : vector<1x128xf32> to vector<16x128xf32>
    %45 = arith.addf %42, %44 : vector<16x128xf32>
    %cst_31 = arith.constant 0.000000e+00 : f32
    %46 = vector.broadcast %cst_31 : f32 to vector<16x128xf32>
    %47 = arith.maximumf %45, %46 : vector<16x128xf32>
    %c0_32 = arith.constant 0 : index
    %c0_33 = arith.constant 0 : index
    %c0_34 = arith.constant 0 : index
    %48 = vector.load %arg16[%c0_32, %c0_33, %c0_34] : memref<1x16x128xf32, #tpu.memory_space<vmem>>, vector<1x16x128xf32>
    %49 = vector.shape_cast %48 : vector<1x16x128xf32> to vector<16x128xf32>
    %50 = vector.shape_cast %47 : vector<16x128xf32> to vector<1x16x128xf32>
    tpu.vector_store %arg16[%c0_32, %c0_33, %c0_34], %50 {strides = array<i32>} : memref<1x16x128xf32, #tpu.memory_space<vmem>>, vector<1x16x128xf32>,
    %c0_35 = arith.constant 0 : index
    %c0_36 = arith.constant 0 : index
    %c0_37 = arith.constant 0 : index
    %51 = vector.load %arg16[%c0_35, %c0_36, %c0_37] : memref<1x16x128xf32, #tpu.memory_space<vmem>>, vector<1x10x128xf32>
    %52 = vector.shape_cast %51 : vector<1x10x128xf32> to vector<10x128xf32>
    %53 = arith.truncf %52 : vector<10x128xf32> to vector<10x128xbf16>
    %c0_38 = arith.constant 0 : index
    %c0_39 = arith.constant 0 : index
    %c0_40 = arith.constant 0 : index
    %54 = vector.load %arg17[%c0_38, %c0_39, %c0_40] : memref<1x10x640xbf16, #tpu.memory_space<vmem>>, vector<1x10x128xbf16>
    %55 = vector.shape_cast %54 : vector<1x10x128xbf16> to vector<10x128xbf16>
    %56 = vector.shape_cast %53 : vector<10x128xbf16> to vector<1x10x128xbf16>
    tpu.vector_store %arg17[%c0_38, %c0_39, %c0_40], %56 {strides = array<i32>} : memref<1x10x640xbf16, #tpu.memory_space<vmem>>, vector<1x10x128xbf16>,
    %c0_41 = arith.constant 0 : index
    %c1_42 = arith.constant 1 : index
    %c0_43 = arith.constant 0 : index
    %57 = vector.load %arg16[%c0_41, %c1_42, %c0_43] : memref<1x16x128xf32, #tpu.memory_space<vmem>>, vector<1x10x128xf32>
    %58 = vector.shape_cast %57 : vector<1x10x128xf32> to vector<10x128xf32>
    %59 = arith.truncf %58 : vector<10x128xf32> to vector<10x128xbf16>
    %c0_44 = arith.constant 0 : index
    %c0_45 = arith.constant 0 : index
    %c128_46 = arith.constant 128 : index
    %60 = vector.load %arg17[%c0_44, %c0_45, %c128_46] : memref<1x10x640xbf16, #tpu.memory_space<vmem>>, vector<1x10x128xbf16>
    %61 = vector.shape_cast %60 : vector<1x10x128xbf16> to vector<10x128xbf16>
    %62 = vector.shape_cast %59 : vector<10x128xbf16> to vector<1x10x128xbf16>
    tpu.vector_store %arg17[%c0_44, %c0_45, %c128_46], %62 {strides = array<i32>} : memref<1x10x640xbf16, #tpu.memory_space<vmem>>, vector<1x10x128xbf16>,
    %c0_47 = arith.constant 0 : index
    %c2_48 = arith.constant 2 : index
    %c0_49 = arith.constant 0 : index
    %63 = vector.load %arg16[%c0_47, %c2_48, %c0_49] : memref<1x16x128xf32, #tpu.memory_space<vmem>>, vector<1x10x128xf32>
    %64 = vector.shape_cast %63 : vector<1x10x128xf32> to vector<10x128xf32>
    %65 = arith.truncf %64 : vector<10x128xf32> to vector<10x128xbf16>
    %c0_50 = arith.constant 0 : index
    %c0_51 = arith.constant 0 : index
    %c256_52 = arith.constant 256 : index
    %66 = vector.load %arg17[%c0_50, %c0_51, %c256_52] : memref<1x10x640xbf16, #tpu.memory_space<vmem>>, vector<1x10x128xbf16>
    %67 = vector.shape_cast %66 : vector<1x10x128xbf16> to vector<10x128xbf16>
    %68 = vector.shape_cast %65 : vector<10x128xbf16> to vector<1x10x128xbf16>
    tpu.vector_store %arg17[%c0_50, %c0_51, %c256_52], %68 {strides = array<i32>} : memref<1x10x640xbf16, #tpu.memory_space<vmem>>, vector<1x10x128xbf16>,
    %c0_53 = arith.constant 0 : index
    %c3_54 = arith.constant 3 : index
    %c0_55 = arith.constant 0 : index
    %69 = vector.load %arg16[%c0_53, %c3_54, %c0_55] : memref<1x16x128xf32, #tpu.memory_space<vmem>>, vector<1x10x128xf32>
    %70 = vector.shape_cast %69 : vector<1x10x128xf32> to vector<10x128xf32>
    %71 = arith.truncf %70 : vector<10x128xf32> to vector<10x128xbf16>
    %c0_56 = arith.constant 0 : index
    %c0_57 = arith.constant 0 : index
    %c384_58 = arith.constant 384 : index
    %72 = vector.load %arg17[%c0_56, %c0_57, %c384_58] : memref<1x10x640xbf16, #tpu.memory_space<vmem>>, vector<1x10x128xbf16>
    %73 = vector.shape_cast %72 : vector<1x10x128xbf16> to vector<10x128xbf16>
    %74 = vector.shape_cast %71 : vector<10x128xbf16> to vector<1x10x128xbf16>
    tpu.vector_store %arg17[%c0_56, %c0_57, %c384_58], %74 {strides = array<i32>} : memref<1x10x640xbf16, #tpu.memory_space<vmem>>, vector<1x10x128xbf16>,
    %c0_59 = arith.constant 0 : index
    %c4_60 = arith.constant 4 : index
    %c0_61 = arith.constant 0 : index
    %75 = vector.load %arg16[%c0_59, %c4_60, %c0_61] : memref<1x16x128xf32, #tpu.memory_space<vmem>>, vector<1x10x128xf32>
    %76 = vector.shape_cast %75 : vector<1x10x128xf32> to vector<10x128xf32>
    %77 = arith.truncf %76 : vector<10x128xf32> to vector<10x128xbf16>
    %c0_62 = arith.constant 0 : index
    %c0_63 = arith.constant 0 : index
    %c512_64 = arith.constant 512 : index
    %78 = vector.load %arg17[%c0_62, %c0_63, %c512_64] : memref<1x10x640xbf16, #tpu.memory_space<vmem>>, vector<1x10x128xbf16>
    %79 = vector.shape_cast %78 : vector<1x10x128xbf16> to vector<10x128xbf16>
    %80 = vector.shape_cast %77 : vector<10x128xbf16> to vector<1x10x128xbf16>
    tpu.vector_store %arg17[%c0_62, %c0_63, %c512_64], %80 {strides = array<i32>} : memref<1x10x640xbf16, #tpu.memory_space<vmem>>, vector<1x10x128xbf16>,
    %c0_65 = arith.constant 0 : index
    %c0_66 = arith.constant 0 : index
    %c0_67 = arith.constant 0 : index
    %81 = vector.load %arg17[%c0_65, %c0_66, %c0_67] : memref<1x10x640xbf16, #tpu.memory_space<vmem>>, vector<1x10x640xbf16>
    %82 = vector.shape_cast %81 : vector<1x10x640xbf16> to vector<10x640xbf16>
    %c0_68 = arith.constant 0 : index
    %c0_69 = arith.constant 0 : index
    %83 = vector.load %arg5[%c0_68, %c0_69] : memref<640x256xbf16, #tpu.memory_space<vmem>>, vector<640x256xbf16>
    %cst_70 = arith.constant dense<0.000000e+00> : vector<10x256xf32>
    %84 = tpu.matmul %82, %83, %cst_70 {dimension_numbers = #tpu.dot_dimension_numbers<[1], [0], [0], [1], [0, 0, 1, 1], [], []>} : vector<10x640xbf16>, vector<640x256xbf16>, vector<10x256xf32> -> vector<10x256xf32>
    %85 = vector.extract_strided_slice %84 {offsets = [0, 0], sizes = [10, 128], strides = [1, 1]} : vector<10x256xf32> to vector<10x128xf32>
    %86 = vector.extract_strided_slice %84 {offsets = [0, 128], sizes = [10, 128], strides = [1, 1]} : vector<10x256xf32> to vector<10x128xf32>
    %87 = arith.maximumf %85, %86 : vector<10x128xf32>
    %88 = arith.truncf %87 : vector<10x128xf32> to vector<10x128xbf16>
    %c0_71 = arith.constant 0 : index
    %c0_72 = arith.constant 0 : index
    %89 = vector.load %arg6[%c0_71, %c0_72] : memref<16x10xbf16, #tpu.memory_space<vmem>>, vector<16x10xbf16>
    %cst_73 = arith.constant dense<0.000000e+00> : vector<16x128xf32>
    %90 = tpu.matmul %89, %88, %cst_73 {dimension_numbers = #tpu.dot_dimension_numbers<[1], [0], [0], [1], [0, 0, 1, 1], [], []>} : vector<16x10xbf16>, vector<10x128xbf16>, vector<16x128xf32> -> vector<16x128xf32>
    %91 = vector.extract_strided_slice %90 {offsets = [0, 0], sizes = [8, 128], strides = [1, 1]} : vector<16x128xf32> to vector<8x128xf32>
    %92 = vector.extract_strided_slice %90 {offsets = [8, 0], sizes = [8, 128], strides = [1, 1]} : vector<16x128xf32> to vector<8x128xf32>
    %93 = arith.maximumf %91, %92 : vector<8x128xf32>
    %c0_74 = arith.constant 0 : index
    %c0_75 = arith.constant 0 : index
    %94 = vector.load %arg7[%c0_74, %c0_75] : memref<1x128xf32, #tpu.memory_space<vmem>>, vector<1x128xf32>
    %95 = vector.broadcast %94 : vector<1x128xf32> to vector<8x128xf32>
    %96 = arith.addf %93, %95 : vector<8x128xf32>
    %cst_76 = arith.constant 0.000000e+00 : f32
    %97 = vector.broadcast %cst_76 : f32 to vector<8x128xf32>
    %98 = arith.maximumf %96, %97 : vector<8x128xf32>
    %c0_77 = arith.constant 0 : index
    %c0_78 = arith.constant 0 : index
    %c0_79 = arith.constant 0 : index
    %99 = vector.load %arg18[%c0_77, %c0_78, %c0_79] : memref<1x8x128xf32, #tpu.memory_space<vmem>>, vector<1x8x128xf32>
    %100 = vector.shape_cast %99 : vector<1x8x128xf32> to vector<8x128xf32>
    %101 = vector.shape_cast %98 : vector<8x128xf32> to vector<1x8x128xf32>
    tpu.vector_store %arg18[%c0_77, %c0_78, %c0_79], %101 {strides = array<i32>} : memref<1x8x128xf32, #tpu.memory_space<vmem>>, vector<1x8x128xf32>,
    %c0_80 = arith.constant 0 : index
    %c0_81 = arith.constant 0 : index
    %c0_82 = arith.constant 0 : index
    %102 = vector.load %arg18[%c0_80, %c0_81, %c0_82] : memref<1x8x128xf32, #tpu.memory_space<vmem>>, vector<1x1x128xf32>
    %103 = vector.shape_cast %102 : vector<1x1x128xf32> to vector<1x128xf32>
    %104 = arith.truncf %103 : vector<1x128xf32> to vector<1x128xbf16>
    %c0_83 = arith.constant 0 : index
    %c0_84 = arith.constant 0 : index
    %105 = vector.load %arg19[%c0_83, %c0_84] : memref<1x640xbf16, #tpu.memory_space<vmem>>, vector<1x128xbf16>
    tpu.vector_store %arg19[%c0_83, %c0_84], %104 {strides = array<i32>} : memref<1x640xbf16, #tpu.memory_space<vmem>>, vector<1x128xbf16>,
    %c0_85 = arith.constant 0 : index
    %c1_86 = arith.constant 1 : index
    %c0_87 = arith.constant 0 : index
    %106 = vector.load %arg18[%c0_85, %c1_86, %c0_87] : memref<1x8x128xf32, #tpu.memory_space<vmem>>, vector<1x1x128xf32>
    %107 = vector.shape_cast %106 : vector<1x1x128xf32> to vector<1x128xf32>
    %108 = arith.truncf %107 : vector<1x128xf32> to vector<1x128xbf16>
    %c0_88 = arith.constant 0 : index
    %c128_89 = arith.constant 128 : index
    %109 = vector.load %arg19[%c0_88, %c128_89] : memref<1x640xbf16, #tpu.memory_space<vmem>>, vector<1x128xbf16>
    tpu.vector_store %arg19[%c0_88, %c128_89], %108 {strides = array<i32>} : memref<1x640xbf16, #tpu.memory_space<vmem>>, vector<1x128xbf16>,
    %c0_90 = arith.constant 0 : index
    %c2_91 = arith.constant 2 : index
    %c0_92 = arith.constant 0 : index
    %110 = vector.load %arg18[%c0_90, %c2_91, %c0_92] : memref<1x8x128xf32, #tpu.memory_space<vmem>>, vector<1x1x128xf32>
    %111 = vector.shape_cast %110 : vector<1x1x128xf32> to vector<1x128xf32>
    %112 = arith.truncf %111 : vector<1x128xf32> to vector<1x128xbf16>
    %c0_93 = arith.constant 0 : index
    %c256_94 = arith.constant 256 : index
    %113 = vector.load %arg19[%c0_93, %c256_94] : memref<1x640xbf16, #tpu.memory_space<vmem>>, vector<1x128xbf16>
    tpu.vector_store %arg19[%c0_93, %c256_94], %112 {strides = array<i32>} : memref<1x640xbf16, #tpu.memory_space<vmem>>, vector<1x128xbf16>,
    %c0_95 = arith.constant 0 : index
    %c3_96 = arith.constant 3 : index
    %c0_97 = arith.constant 0 : index
    %114 = vector.load %arg18[%c0_95, %c3_96, %c0_97] : memref<1x8x128xf32, #tpu.memory_space<vmem>>, vector<1x1x128xf32>
    %115 = vector.shape_cast %114 : vector<1x1x128xf32> to vector<1x128xf32>
    %116 = arith.truncf %115 : vector<1x128xf32> to vector<1x128xbf16>
    %c0_98 = arith.constant 0 : index
    %c384_99 = arith.constant 384 : index
    %117 = vector.load %arg19[%c0_98, %c384_99] : memref<1x640xbf16, #tpu.memory_space<vmem>>, vector<1x128xbf16>
    tpu.vector_store %arg19[%c0_98, %c384_99], %116 {strides = array<i32>} : memref<1x640xbf16, #tpu.memory_space<vmem>>, vector<1x128xbf16>,
    %c0_100 = arith.constant 0 : index
    %c4_101 = arith.constant 4 : index
    %c0_102 = arith.constant 0 : index
    %118 = vector.load %arg18[%c0_100, %c4_101, %c0_102] : memref<1x8x128xf32, #tpu.memory_space<vmem>>, vector<1x1x128xf32>
    %119 = vector.shape_cast %118 : vector<1x1x128xf32> to vector<1x128xf32>
    %120 = arith.truncf %119 : vector<1x128xf32> to vector<1x128xbf16>
    %c0_103 = arith.constant 0 : index
    %c512_104 = arith.constant 512 : index
    %121 = vector.load %arg19[%c0_103, %c512_104] : memref<1x640xbf16, #tpu.memory_space<vmem>>, vector<1x128xbf16>
    tpu.vector_store %arg19[%c0_103, %c512_104], %120 {strides = array<i32>} : memref<1x640xbf16, #tpu.memory_space<vmem>>, vector<1x128xbf16>,
    %c0_105 = arith.constant 0 : index
    %c0_106 = arith.constant 0 : index
    %122 = vector.load %arg19[%c0_105, %c0_106] : memref<1x640xbf16, #tpu.memory_space<vmem>>, vector<1x640xbf16>
    %c0_107 = arith.constant 0 : index
    %c0_108 = arith.constant 0 : index
    %123 = vector.load %arg8[%c0_107, %c0_108] : memref<640x128xbf16, #tpu.memory_space<vmem>>, vector<640x128xbf16>
    %cst_109 = arith.constant dense<0.000000e+00> : vector<1x128xf32>
    %124 = tpu.matmul %122, %123, %cst_109 {dimension_numbers = #tpu.dot_dimension_numbers<[1], [0], [0], [1], [0, 0, 1, 1], [], []>} : vector<1x640xbf16>, vector<640x128xbf16>, vector<1x128xf32> -> vector<1x128xf32>
    %c0_110 = arith.constant 0 : index
    %c0_111 = arith.constant 0 : index
    %125 = vector.load %arg9[%c0_110, %c0_111] : memref<1x128xf32, #tpu.memory_space<vmem>>, vector<1x128xf32>
    %126 = arith.addf %124, %125 : vector<1x128xf32>
    %cst_112 = arith.constant 0.000000e+00 : f32
    %127 = vector.broadcast %cst_112 : f32 to vector<1x128xf32>
    %128 = arith.maximumf %126, %127 : vector<1x128xf32>
    %129 = arith.truncf %128 : vector<1x128xf32> to vector<1x128xbf16>
    %c0_113 = arith.constant 0 : index
    %c0_114 = arith.constant 0 : index
    %130 = vector.load %arg10[%c0_113, %c0_114] : memref<128x128xbf16, #tpu.memory_space<vmem>>, vector<128x128xbf16>
    %cst_115 = arith.constant dense<0.000000e+00> : vector<1x128xf32>
    %131 = tpu.matmul %129, %130, %cst_115 {dimension_numbers = #tpu.dot_dimension_numbers<[1], [0], [0], [1], [0, 0, 1, 1], [], []>} : vector<1x128xbf16>, vector<128x128xbf16>, vector<1x128xf32> -> vector<1x128xf32>
    %c0_116 = arith.constant 0 : index
    %c0_117 = arith.constant 0 : index
    %132 = vector.load %arg11[%c0_116, %c0_117] : memref<1x128xf32, #tpu.memory_space<vmem>>, vector<1x128xf32>
    %133 = arith.addf %131, %132 : vector<1x128xf32>
    %cst_118 = arith.constant 0.000000e+00 : f32
    %134 = vector.broadcast %cst_118 : f32 to vector<1x128xf32>
    %135 = arith.maximumf %133, %134 : vector<1x128xf32>
    %136 = arith.truncf %135 : vector<1x128xf32> to vector<1x128xbf16>
    %c0_119 = arith.constant 0 : index
    %c0_120 = arith.constant 0 : index
    %137 = vector.load %arg12[%c0_119, %c0_120] : memref<128x128xbf16, #tpu.memory_space<vmem>>, vector<128x128xbf16>
    %cst_121 = arith.constant dense<0.000000e+00> : vector<1x128xf32>
    %138 = tpu.matmul %136, %137, %cst_121 {dimension_numbers = #tpu.dot_dimension_numbers<[1], [0], [0], [1], [0, 0, 1, 1], [], []>} : vector<1x128xbf16>, vector<128x128xbf16>, vector<1x128xf32> -> vector<1x128xf32>
    %c0_122 = arith.constant 0 : index
    %c0_123 = arith.constant 0 : index
    %139 = vector.load %arg13[%c0_122, %c0_123] : memref<1x128xf32, #tpu.memory_space<vmem>>, vector<1x128xf32>
    %140 = arith.addf %138, %139 : vector<1x128xf32>
    %c0_124 = arith.constant 0 : index
    %c0_125 = arith.constant 0 : index
    %c0_126 = arith.constant 0 : index
    %141 = vector.load %arg14[%c0_124, %c0_125, %c0_126] : memref<1x1x128xf32, #tpu.memory_space<vmem>>, vector<1x1x128xf32>
    %142 = vector.shape_cast %141 : vector<1x1x128xf32> to vector<1x128xf32>
    %143 = vector.shape_cast %140 : vector<1x128xf32> to vector<1x1x128xf32>
    tpu.vector_store %arg14[%c0_124, %c0_125, %c0_126], %143 {strides = array<i32>} : memref<1x1x128xf32, #tpu.memory_space<vmem>>, vector<1x1x128xf32>,
    return
  }
  func.func @transform_0(%arg0: i32) -> (i32, i32, i32) {
    %c0_i32 = arith.constant 0 : i32
    %c0_i32_0 = arith.constant 0 : i32
    %c0_i32_1 = arith.constant 0 : i32
    return %arg0, %c0_i32, %c0_i32_0 : i32, i32, i32
  }
  func.func @transform_1(%arg0: i32) -> (i32, i32) {
    %c0_i32 = arith.constant 0 : i32
    %c0_i32_0 = arith.constant 0 : i32
    %c0_i32_1 = arith.constant 0 : i32
    return %c0_i32, %c0_i32_0 : i32, i32
  }
  func.func @transform_2(%arg0: i32) -> (i32, i32) {
    %c0_i32 = arith.constant 0 : i32
    %c0_i32_0 = arith.constant 0 : i32
    %c0_i32_1 = arith.constant 0 : i32
    return %c0_i32, %c0_i32_0 : i32, i32
  }
  func.func @transform_3(%arg0: i32) -> (i32, i32) {
    %c0_i32 = arith.constant 0 : i32
    %c0_i32_0 = arith.constant 0 : i32
    %c0_i32_1 = arith.constant 0 : i32
    return %c0_i32, %c0_i32_0 : i32, i32
  }
  func.func @transform_4(%arg0: i32) -> (i32, i32) {
    %c0_i32 = arith.constant 0 : i32
    %c0_i32_0 = arith.constant 0 : i32
    %c0_i32_1 = arith.constant 0 : i32
    return %c0_i32, %c0_i32_0 : i32, i32
  }
  func.func @transform_5(%arg0: i32) -> (i32, i32) {
    %c0_i32 = arith.constant 0 : i32
    %c0_i32_0 = arith.constant 0 : i32
    %c0_i32_1 = arith.constant 0 : i32
    return %c0_i32, %c0_i32_0 : i32, i32
  }
  func.func @transform_6(%arg0: i32) -> (i32, i32) {
    %c0_i32 = arith.constant 0 : i32
    %c0_i32_0 = arith.constant 0 : i32
    %c0_i32_1 = arith.constant 0 : i32
    return %c0_i32, %c0_i32_0 : i32, i32
  }
  func.func @transform_7(%arg0: i32) -> (i32, i32) {
    %c0_i32 = arith.constant 0 : i32
    %c0_i32_0 = arith.constant 0 : i32
    %c0_i32_1 = arith.constant 0 : i32
    return %c0_i32, %c0_i32_0 : i32, i32
  }
  func.func @transform_8(%arg0: i32) -> (i32, i32) {
    %c0_i32 = arith.constant 0 : i32
    %c0_i32_0 = arith.constant 0 : i32
    %c0_i32_1 = arith.constant 0 : i32
    return %c0_i32, %c0_i32_0 : i32, i32
  }
  func.func @transform_9(%arg0: i32) -> (i32, i32) {
    %c0_i32 = arith.constant 0 : i32
    %c0_i32_0 = arith.constant 0 : i32
    %c0_i32_1 = arith.constant 0 : i32
    return %c0_i32, %c0_i32_0 : i32, i32
  }
  func.func @transform_10(%arg0: i32) -> (i32, i32) {
    %c0_i32 = arith.constant 0 : i32
    %c0_i32_0 = arith.constant 0 : i32
    %c0_i32_1 = arith.constant 0 : i32
    return %c0_i32, %c0_i32_0 : i32, i32
  }
  func.func @transform_11(%arg0: i32) -> (i32, i32) {
    %c0_i32 = arith.constant 0 : i32
    %c0_i32_0 = arith.constant 0 : i32
    %c0_i32_1 = arith.constant 0 : i32
    return %c0_i32, %c0_i32_0 : i32, i32
  }
  func.func @transform_12(%arg0: i32) -> (i32, i32) {
    %c0_i32 = arith.constant 0 : i32
    %c0_i32_0 = arith.constant 0 : i32
    %c0_i32_1 = arith.constant 0 : i32
    return %c0_i32, %c0_i32_0 : i32, i32
  }
  func.func @transform_13(%arg0: i32) -> (i32, i32, i32) {
    %c0_i32 = arith.constant 0 : i32
    %c0_i32_0 = arith.constant 0 : i32
    %c0_i32_1 = arith.constant 0 : i32
    return %arg0, %c0_i32, %c0_i32_0 : i32, i32, i32
  }
}

</mosaic_0001>

<bundles_post_ra>
// kernel: net_forward.1
= control target key start
LH: loop header
LB: loop body
LE: loop exit
PB: predicated region body
PF: predicated region fallthrough
CT: control target
= control target key end

     0   :  { %s5378_s0 = inlined_call_operand.vmem [shape: f32[2,32,128], index: 0, kind: input, shape index: {}]   ;;  %s5379_s1 = inlined_call_operand.vmem [shape: bf16[640,256], index: 1, kind: input, shape index: {}]   ;;  %s5380_s2 = inlined_call_operand.hbm [shape: bf16[32,28], index: 2, kind: input, shape index: {}]   ;;  %s5381_s3 = inlined_call_operand.hbm [shape: f32[1,128], index: 3, kind: input, shape index: {}]   ;;  %s5382_s4 = inlined_call_operand.hbm [shape: bf16[640,256], index: 4, kind: input, shape index: {}]   ;;  %s5383_s5 = inlined_call_operand.vmem [shape: bf16[16,10], index: 5, kind: input, shape index: {}]   ;;  %s5384_s6 = inlined_call_operand.hbm [shape: f32[1,128], index: 6, kind: input, shape index: {}]   ;;  %s5385_s7 = inlined_call_operand.hbm [shape: bf16[640,128], index: 7, kind: input, shape index: {}]   ;;  %s5386_s8 = inlined_call_operand.hbm [shape: f32[1,128], index: 8, kind: input, shape index: {}]   ;;  %s5387_s9 = inlined_call_operand.vmem [shape: bf16[128,128], index: 9, kind: input, shape index: {}]   ;;  %s5388_s10 = inlined_call_operand.hbm [shape: f32[1,128], index: 10, kind: input, shape index: {}]   ;;  %s5389_s11 = inlined_call_operand.vmem [shape: bf16[128,128], index: 11, kind: input, shape index: {}]   ;;  %s5390_s12 = inlined_call_operand.hbm [shape: f32[1,128], index: 12, kind: input, shape index: {}]   ;;  %s5391_s13 = inlined_call_operand.hbm [shape: f32[2,1,128], index: 13, kind: output, shape index: {}]  }
   0x1   :  { %5397 = sst [smem:[#allocation33_spill]] %s5380_s2 }
   0x2   :  { %5398 = sst [smem:[#allocation34_spill]] %s5381_s3 }
   0x3   :  { %5399 = sst [smem:[#allocation35_spill]] %s5382_s4 }
   0x4   :  { %5400 = sst [smem:[#allocation36_spill]] %s5384_s6 }
   0x5   :  { %5401 = sst [smem:[#allocation37_spill]] %s5385_s7 }
   0x6   :  { %5402 = sst [smem:[#allocation38_spill]] %s5386_s8 }
   0x7   :  { %18 = vsyncpa [#allocation8], 0 }
   0x8   :  { %19 = vsyncpa [#allocation11], 0 }
   0x9   :  { %20 = vsyncpa [#allocation14], 0 }
   0xa   :  { %21 = vsyncpa [#allocation17], 0 }
   0xb   :  { %22 = vsyncpa [#allocation20], 0 }
   0xc   :  { %23 = vsyncpa [#allocation9], 0 }
   0xd   :  { %25 = vsyncpa [#allocation9 + $0x1], 0  ;;  %s4605_s25 = smov 0   ;;  %s4607_s26 = smov 0  }
   0xe   :  { %s4609_s27 = smov 0   ;;  %s4611_s28 = smov 0  }
   0xf LB: > { %5403 = sst [smem:[#allocation28_spill]] %s4509_s25  ;;  %s4626_s29 = sadd.s32 4294967295, %s4521_s28   ;;  %s4521_s28 = sphi %s4611_s28, %s5422_s28   ;;  %s4517_s27 = sphi %s4609_s27, %s5424_s27   ;;  %s4513_s26 = sphi %s4607_s26, %s5426_s26   ;;  %s4509_s25 = sphi %s4605_s25, %s5425_s25  }
  0x10   : > { %5404 = sst [smem:[#allocation29_spill]] %s4517_s27  ;;  %s2875_s30 = sadd.s32 4294967294, %s4521_s28  }
  0x11   : > { %s4630_s14 = sadd.s32 1, %s4521_s28   ;;  %s316_s15 = sadd.s32 1, %s4517_s27 }
  0x12   : > { %5405 = sst [smem:[#allocation30_spill]] %s4630_s14  ;;  %s313_s16 = ssub.s32 %s4521_s28, %s4630_s14 }
  0x13   : > { %p326_p0 = scmp.ne.s32.totalorder %s4517_s27, %s4513_s26  ;;  %p314_p1 = scmp.eq.s32.totalorder %s313_s16, 0 }
  0x14   : > { %p327_p2 = scmp.eq.s32.totalorder %s4626_s29, 1  ;;  %p332_p3 = scmp.ne.s32.totalorder %s4513_s26, %s4509_s25 }
  0x15   : > { %p333_p4 = scmp.eq.s32.totalorder %s2875_s30, 1  ;;  %p2876_p7 = scmp.ge.s32.totalorder %s4521_s28, 1 }
  0x16   : > { %s4641_s17 = scalar_select %p314_p1, %s4517_s27, %s316_s15  }
  0x17   : > { %p4643_p5 = por %p327_p2, %p326_p0  ;;  %p4647_p6 = por %p333_p4, %p332_p3 }
  0x18   : > { %5406 = sst [smem:[#allocation31_spill]] %s4641_s17  ;;  %p340_p8 = scmp.lt.s32.totalorder %s4521_s28, 3 }
  0x19   : > { %s5408_s19 = scalar_select %p4647_p6, 1, 0 }
  0x1a   : > { %p4136_p9 = scmp.eq.s32.totalorder %s4626_s29, 0  ;;  %p4654_p10 = pnand %p2876_p7, %p340_p8 }
  0x1b   : > { %5409 = sst [smem:[#allocation32_spill]] %s5408_s19  ;;  %s4523_s24 = smov [#allocation10]  }
  0x1c   : > { %s5411_s3 = sld [smem:[#allocation34_spill]]  ;;  %p4107_p11 = pneg %p4654_p10 }
  0x1d   : > { %s371_s30 = sshll.u32 %s4523_s24, 4  ;;  %s5412_s6 = sld [smem:[#allocation36_spill]]  ;;  %s372_s30 = int_to_ptr.vmem [resolvable:$true] %s371_s30 }
  0x1e   : > { %p4668_p12 = pnand %p4136_p9, %p4107_p11  ;;  %s5414_s8 = sld [smem:[#allocation38_spill]] }
  0x1f   : > { %s4524_s14 = smov [#allocation13]   ;;  %s5415_s2 = sld [smem:[#allocation33_spill]] }
  0x20   : > { %s400_s24 = sshll.u32 %s4524_s14, 4  ;;  %s4525_s19 = smov [#allocation16]   ;;  %s401_s24 = int_to_ptr.vmem [resolvable:$true] %s400_s24 }
  0x21   : > { %s426_s25 = sshll.u32 %s4525_s19, 4  ;;  %s4526_s21 = smov [#allocation7]   ;;  %s427_s25 = int_to_ptr.vmem [resolvable:$true] %s426_s25 }
  0x22   : > { %s369_s23 = sshll.u32 %s5411_s3, 4  ;;  %s356_s14 = sshll.u32 %s4526_s21, 4  ;;  %s370_s23 = int_to_ptr.hbm [resolvable:$true] %s369_s23  ;;  %s357_s14 = int_to_ptr.vmem [resolvable:$true] %s356_s14 }
  0x23   : > { %s398_s17 = sshll.u32 %s5412_s6, 4  ;;  %s4527_s22 = smov 64   ;;  %s399_s17 = int_to_ptr.hbm [resolvable:$true] %s398_s17 }
  0x24   : > { %s424_s3 = sshll.u32 %s5414_s8, 4  ;;  %s5416_s4 = sld [smem:[#allocation35_spill]]  ;;  %s425_s3 = int_to_ptr.hbm [resolvable:$true] %s424_s3 }
  0x25   : > { %4113 = dma.hbm_to_vmem [thread:$0]  (!%p4668_p12), %s370_s23, 16, %s372_s30, [#allocation11]  }
  0x26   : > { %4119 = dma.hbm_to_vmem [thread:$0]  (!%p4668_p12), %s399_s17, 16, %s401_s24, [#allocation14]  }
  0x27   : > { %s354_s6 = sshll.u32 %s5415_s2, 4  ;;  %s4528_s23 = smov 4   ;;  %s355_s6 = int_to_ptr.hbm [resolvable:$true] %s354_s6 }
  0x28   : > { %4125 = dma.hbm_to_vmem [thread:$0]  (!%p4668_p12), %s425_s3, 16, %s427_s25, [#allocation17]  }
  0x29   : > { %4110 = dma.hbm_to_vmem [thread:$0]  (!%p4668_p12), %s355_s6, 256, %s357_s14, [#allocation8], %s4527_s22, %s4527_s22, %s4528_s23  }
  0x2a   : > { %s380_s24 = sshll.u32 %s5416_s4, 4  ;;  %s4529_s15 = smov [#allocation12]   ;;  %s381_s24 = int_to_ptr.hbm [resolvable:$true] %s380_s24 }
  0x2b   : > { %s382_s19 = sshll.u32 %s4529_s15, 4  ;;  %s5417_s7 = sld [smem:[#allocation37_spill]]  ;;  %s383_s19 = int_to_ptr.vmem [resolvable:$true] %s382_s19 }
  0x2c   : > { %s4530_s25 = smov 128   ;;  %s4531_s21 = smov 8  }
  0x2d   : > { %4116 = dma.hbm_to_vmem [thread:$0]  (!%p4668_p12), %s381_s24, 10240, %s383_s19, [#allocation11], %s4530_s25, %s4530_s25, %s4531_s21  }
  0x2e   : > { %s4532_s6 = smov [#allocation15]   ;;  %s439_s4 = sshll.u32 %s5388_s10, 4  ;;  %s440_s4 = int_to_ptr.hbm [resolvable:$true] %s439_s4 }
  0x2f   : > { %s411_s14 = sshll.u32 %s4532_s6, 4  ;;  %s454_s16 = sshll.u32 %s5390_s12, 4  ;;  %s412_s14 = int_to_ptr.vmem [resolvable:$true] %s411_s14  ;;  %s455_s16 = int_to_ptr.hbm [resolvable:$true] %s454_s16 }
  0x30   : > { %s4534_s24 = smov [#allocation19]  }
  0x31   : > { %s409_s3 = sshll.u32 %s5417_s7, 4  ;;  %s4533_s7 = smov [#allocation18]   ;;  %s410_s3 = int_to_ptr.hbm [resolvable:$true] %s409_s3 }
  0x32   : > { %4122 = dma.hbm_to_vmem [thread:$0]  (!%p4668_p12), %s410_s3, 5120, %s412_s14, [#allocation14], %s4527_s22, %s4527_s22, %s4528_s23  }
  0x33   : > { %s441_s8 = sshll.u32 %s4533_s7, 4  ;;  %s456_s19 = sshll.u32 %s4534_s24, 4  ;;  %s442_s8 = int_to_ptr.vmem [resolvable:$true] %s441_s8  ;;  %s457_s19 = int_to_ptr.vmem [resolvable:$true] %s456_s19 }
  0x34   : > { %4128 = dma.hbm_to_vmem [thread:$0]  (!%p4668_p12), %s440_s4, 16, %s442_s8, [#allocation17]  }
  0x35   : > { %4131 = dma.hbm_to_vmem [thread:$0]  (!%p4668_p12), %s455_s16, 16, %s457_s19, [#allocation20]  }
  0x36   : > { %477 = sbr.rel (%p4654_p10) target bundleno = 1302 (0x516), region = 72 }
  0x3b   : > { %4484 = dma.done.wait (%p4136_p9), [#allocation8], 256  }
  0x3c   : > { %4486 = vsyncadd (%p4136_p9), [#allocation8], 4294967040 }
  0x3d   : > { %4488 = dma.done.wait (%p4136_p9), [#allocation11], 10256  }
  0x3e   : > { %4490 = vsyncadd (%p4136_p9), [#allocation11], 4294957040 }
  0x3f   : > { %4492 = dma.done.wait (%p4136_p9), [#allocation14], 5136  }
  0x40   : > { %4494 = vsyncadd (%p4136_p9), [#allocation14], 4294962160 }
  0x41   : > { %4496 = dma.done.wait (%p4136_p9), [#allocation17], 32  }
  0x42   : > { %4498 = vsyncadd (%p4136_p9), [#allocation17], 4294967264 }
  0x43   : > { %4500 = dma.done.wait (%p4136_p9), [#allocation20], 16  }
  0x44   : > { %4502 = vsyncadd (%p4136_p9), [#allocation20], 4294967280  ;;  %p556_p13 = scmp.lt.s32.totalorder %s4626_s29, 1  ;;  %v2995_v0 = vld [vmem:[%s5379_s1 + $0x70] sm:$0xf]  ;;  %vm1383_vm0 = vcmask 1045504   ;;  %s2737_s17 = scalar_lea.hbm %s5391_s13, %s4626_s29 }
  0x45   : > { %v3864_v1 = vld [vmem:[%s5379_s1 + $0x74] sm:$0xf0]  ;;  %v3059_v2 = vld [vmem:[%s5379_s1 + $0xf0] sm:$0xf]  ;;  %v2987_v11 = vld [vmem:[%s5379_s1 + $0x60] sm:$0xf] }
  0x46   : > { %v2996_v3 = vor.u32 %v3864_v1, %v2995_v0  ;;  %v3880_v4 = vld [vmem:[%s5379_s1 + $0xf4] sm:$0xf0]  ;;  %v3123_v5 = vld [vmem:[%s5379_s1 + $0x170] sm:$0xf]  ;;  %v3862_v13 = vld [vmem:[%s5379_s1 + $0x64] sm:$0xf0] }
  0x47   : > { %v3896_v6 = vld [vmem:[%s5379_s1 + $0x174] sm:$0xf0]  ;;  %v3060_v7 = vor.u32 %v3880_v4, %v3059_v2  ;;  %v3187_v9 = vld [vmem:[%s5379_s1 + $0x1f0] sm:$0xf]  ;;  %v3051_v14 = vld [vmem:[%s5379_s1 + $0xe0] sm:$0xf]  ;;  %v2988_v16 = vor.u32 %v3862_v13, %v2987_v11 }
  0x48   : > { %v3124_v8 = vor.u32 %v3896_v6, %v3123_v5  ;;  %v3912_v10 = vld [vmem:[%s5379_s1 + $0x1f4] sm:$0xf0]  ;;  %1166 = vmatpush.bf16.msra.mxu0 %v2996_v3  ;;  %v3878_v15 = vld [vmem:[%s5379_s1 + $0xe4] sm:$0xf0]  ;;  %v3115_v18 = vld [vmem:[%s5379_s1 + $0x160] sm:$0xf] }
  0x49   : > { %v3188_v12 = vor.u32 %v3912_v10, %v3187_v9  ;;  %1185 = vmatpush.bf16.msra.mxu1 %v3060_v7  ;;  %v3052_v17 = vor.u32 %v3878_v15, %v3051_v14  ;;  %v3894_v19 = vld [vmem:[%s5379_s1 + $0x164] sm:$0xf0]  ;;  %v3179_v20 = vld [vmem:[%s5379_s1 + $0x1e0] sm:$0xf]  ;;  %v2979_v23 = vld [vmem:[%s5379_s1 + $0x50] sm:$0xf] }
  0x4a   : > { %1204 = vmatpush.bf16.msra.mxu2 %v3124_v8  ;;  %v3116_v21 = vor.u32 %v3894_v19, %v3115_v18  ;;  %v3910_v22 = vld [vmem:[%s5379_s1 + $0x1e4] sm:$0xf0]  ;;  %v3860_v24 = vld [vmem:[%s5379_s1 + $0x54] sm:$0xf0]  ;;  %v3043_v26 = vld [vmem:[%s5379_s1 + $0xd0] sm:$0xf] }
  0x4b   : > { %1223 = vmatpush.bf16.msra.mxu3 %v3188_v12  ;;  %v3180_v25 = vor.u32 %v3910_v22, %v3179_v20  ;;  %v3876_v27 = vld [vmem:[%s5379_s1 + $0xd4] sm:$0xf0]  ;;  %v3107_v28 = vld [vmem:[%s5379_s1 + $0x150] sm:$0xf]  ;;  %v2980_v29 = vor.u32 %v3860_v24, %v2979_v23  ;;  %v2971_v35 = vld [vmem:[%s5379_s1 + $0x40] sm:$0xf] }
  0x4c   : > { %1167 = vmatpush.bf16.msra.mxu0 %v2988_v16  ;;  %v3892_v30 = vld [vmem:[%s5379_s1 + $0x154] sm:$0xf0]  ;;  %v3171_v31 = vld [vmem:[%s5379_s1 + $0x1d0] sm:$0xf]  ;;  %v3044_v33 = vor.u32 %v3876_v27, %v3043_v26  ;;  %v3858_v36 = vld [vmem:[%s5379_s1 + $0x44] sm:$0xf0] }
  0x4d   : > { %v3908_v32 = vld [vmem:[%s5379_s1 + $0x1d4] sm:$0xf0]  ;;  %1186 = vmatpush.bf16.msra.mxu1 %v3052_v17  ;;  %v3108_v34 = vor.u32 %v3892_v30, %v3107_v28  ;;  %v3035_v37 = vld [vmem:[%s5379_s1 + $0xc0] sm:$0xf]  ;;  %v3874_v39 = vld [vmem:[%s5379_s1 + $0xc4] sm:$0xf0]  ;;  %v2972_v44 = vor.u32 %v3858_v36, %v2971_v35 }
  0x4e   : > { %1205 = vmatpush.bf16.msra.mxu2 %v3116_v21  ;;  %v3172_v38 = vor.u32 %v3908_v32, %v3171_v31  ;;  %v3099_v40 = vld [vmem:[%s5379_s1 + $0x140] sm:$0xf]  ;;  %v3890_v41 = vld [vmem:[%s5379_s1 + $0x144] sm:$0xf0]  ;;  %s4828_s3 = scalar_select %p556_p13, %s4626_s29, 1  ;;  %v3036_v45 = vor.u32 %v3874_v39, %v3035_v37  ;;  %vm1376_vm1 = vcmask 228352  }
  0x4f   : > { %1224 = vmatpush.bf16.msra.mxu3 %v3180_v25  ;;  %v3163_v42 = vld [vmem:[%s5379_s1 + $0x1c0] sm:$0xf]  ;;  %v3906_v43 = vld [vmem:[%s5379_s1 + $0x1c4] sm:$0xf0]  ;;  %v3100_v46 = vor.u32 %v3890_v41, %v3099_v40  ;;  %v2963_v47 = vld [vmem:[%s5379_s1 + $0x30] sm:$0xf] }
  0x50   : > { %1168 = vmatpush.bf16.msra.mxu0 %v2980_v29  ;;  %v3856_v48 = vld [vmem:[%s5379_s1 + $0x34] sm:$0xf0]  ;;  %v3027_v49 = vld [vmem:[%s5379_s1 + $0xb0] sm:$0xf]  ;;  %v3164_v50 = vor.u32 %v3906_v43, %v3163_v42  ;;  %s3838_s22 = sshll.u32 %s4828_s3, 5  ;;  %vm2114_vm2 = vcmask 1044480  }
  0x51   : > { %1187 = vmatpush.bf16.msra.mxu1 %v3044_v33  ;;  %v3872_v51 = vld [vmem:[%s5379_s1 + $0xb4] sm:$0xf0]  ;;  %v3091_v52 = vld [vmem:[%s5379_s1 + $0x130] sm:$0xf]  ;;  %v2964_v56 = vor.u32 %v3856_v48, %v2963_v47  ;;  %v2955_v59 = vld [vmem:[%s5379_s1 + $0x20] sm:$0xf]  ;;  %s4885_s21 = scalar_lea.vmem %s5378_s0, %s3838_s22 }
  0x52   : > { %1206 = vmatpush.bf16.msra.mxu2 %v3108_v34  ;;  %v3888_v53 = vld [vmem:[%s5379_s1 + $0x134] sm:$0xf0]  ;;  %v3155_v54 = vld [vmem:[%s5379_s1 + $0x1b0] sm:$0xf]  ;;  %v3028_v57 = vor.u32 %v3872_v51, %v3027_v49  ;;  %v3854_v60 = vld [vmem:[%s5379_s1 + $0x24] sm:$0xf0] }
  0x53   : > { %1225 = vmatpush.bf16.msra.mxu3 %v3172_v38  ;;  %v3904_v55 = vld [vmem:[%s5379_s1 + $0x1b4] sm:$0xf0]  ;;  %v3092_v58 = vor.u32 %v3888_v53, %v3091_v52  ;;  %v3019_v61 = vld [vmem:[%s5379_s1 + $0xa0] sm:$0xf]  ;;  %v3870_v63 = vld [vmem:[%s5379_s1 + $0xa4] sm:$0xf0]  ;;  %v2956_v5 = vor.u32 %v3854_v60, %v2955_v59 }
  0x54   : > { %1169 = vmatpush.bf16.msra.mxu0 %v2972_v44  ;;  %v3156_v62 = vor.u32 %v3904_v55, %v3155_v54  ;;  %v3083_v0 = vld [vmem:[%s5379_s1 + $0x120] sm:$0xf]  ;;  %v3886_v1 = vld [vmem:[%s5379_s1 + $0x124] sm:$0xf0]  ;;  %v2947_v4 = vld [vmem:[%s5379_s1 + $0x10] sm:$0xf]  ;;  %v3020_v9 = vor.u32 %v3870_v63, %v3019_v61 }
  0x55   : > { %1188 = vmatpush.bf16.msra.mxu1 %v3036_v45  ;;  %v3147_v2 = vld [vmem:[%s5379_s1 + $0x1a0] sm:$0xf]  ;;  %v3902_v3 = vld [vmem:[%s5379_s1 + $0x1a4] sm:$0xf0]  ;;  %v3852_v6 = vld [vmem:[%s5379_s1 + $0x14] sm:$0xf0]  ;;  %v3084_v10 = vor.u32 %v3886_v1, %v3083_v0 }
  0x56   : > { %1207 = vmatpush.bf16.msra.mxu2 %v3100_v46  ;;  %v3011_v7 = vld [vmem:[%s5379_s1 + $0x90] sm:$0xf]  ;;  %v3868_v8 = vld [vmem:[%s5379_s1 + $0x94] sm:$0xf0]  ;;  %v3148_v14 = vor.u32 %v3902_v3, %v3147_v2  ;;  %v562_v16 = vld [vmem:[%s4885_s21] sm:$0xff]  ;;  %v2948_v25 = vor.u32 %v3852_v6, %v2947_v4  ;;  %vm2110_vm3 = vcmask 80896  }
  0x57   : > { %1226 = vmatpush.bf16.msra.mxu3 %v3164_v50  ;;  %v3075_v11 = vld [vmem:[%s5379_s1 + $0x110] sm:$0xf]  ;;  %v3884_v12 = vld [vmem:[%s5379_s1 + $0x114] sm:$0xf0]  ;;  %v563_v17 = vld [vmem:[%s4885_s21 + $0x8] sm:$0xff]  ;;  %v566_v20 = vpack.c.bf16 %v562_v16, %v562_v16  ;;  %v3012_v33 = vor.u32 %v3868_v8, %v3011_v7  ;;  %vm2142_vm4 = vcmask 1040384  }
  0x58   : > { %1170 = vmatpush.bf16.msra.mxu0 %v2964_v56  ;;  %v3139_v13 = vld [vmem:[%s5379_s1 + $0x190] sm:$0xf]  ;;  %v3900_v15 = vld [vmem:[%s5379_s1 + $0x194] sm:$0xf0]  ;;  %v4913_v18 = vld [vmem:[%s5379_s1] sm:$0xf]  ;;  %v567_v21 = vpack.c.bf16 %v563_v17, %v563_v17  ;;  %v3076_v34 = vor.u32 %v3884_v12, %v3075_v11 }
  0x59   : > { %1189 = vmatpush.bf16.msra.mxu1 %v3028_v57  ;;  %v3850_v19 = vld [vmem:[%s5379_s1 + $0x4] sm:$0xf0]  ;;  %v3003_v26 = vld [vmem:[%s5379_s1 + $0x80] sm:$0xf]  ;;  %570 = vst [vmem:[#allocation2] sm:$0xf] %v566_v20  ;;  %v3140_v40 = vor.u32 %v3900_v15, %v3139_v13 }
  0x5a   : > { %1208 = vmatpush.bf16.msra.mxu2 %v3092_v58  ;;  %v574_v22 = vld [vmem:[%s4885_s21 + $0x1] sm:$0xff]  ;;  %v575_v23 = vld [vmem:[%s4885_s21 + $0x9] sm:$0xff]  ;;  %v3928_v39 = vld [vmem:[%s5379_s1 + $0x274] sm:$0xf0]  ;;  %571 = vst [vmem:[#allocation2 + $0x14] sm:$0xf] %v567_v21  ;;  %v2940_v48 = vor.u32 %v3850_v19, %v4913_v18 }
  0x5b   : > { %1227 = vmatpush.bf16.msra.mxu3 %v3156_v62  ;;  %v586_v24 = vld [vmem:[%s4885_s21 + $0x2] sm:$0xff]  ;;  %v578_v30 = vpack.c.bf16 %v574_v22, %v574_v22  ;;  %v579_v31 = vpack.c.bf16 %v575_v23, %v575_v23  ;;  %v587_v32 = vld [vmem:[%s4885_s21 + $0xa] sm:$0xff]  ;;  %v3863_v42 = vld [vmem:[%s5379_s1 + $0x74] sm:$0xf]  ;;  %vm2143_vm5 = vsmask.f32 256 }
  0x5c   : > { %1171 = vmatpush.bf16.msra.mxu0 %v2956_v5  ;;  %v3866_v27 = vld [vmem:[%s5379_s1 + $0x84] sm:$0xf0]  ;;  %v3067_v28 = vld [vmem:[%s5379_s1 + $0x100] sm:$0xf]  ;;  %v590_v37 = vpack.c.bf16 %v586_v24, %v586_v24  ;;  %v3251_v38 = vld [vmem:[%s5379_s1 + $0x270] sm:$0xf]  ;;  %v591_v41 = vpack.c.bf16 %v587_v32, %v587_v32 }
  0x5d   : > { %v3882_v29 = vld [vmem:[%s5379_s1 + $0x104] sm:$0xf0]  ;;  %1190 = vmatpush.bf16.msra.mxu1 %v3020_v9  ;;  %v3131_v35 = vld [vmem:[%s5379_s1 + $0x180] sm:$0xf]  ;;  %v2997_v43 = vld [vmem:[%s5379_s1 + $0x78] sm:$0xf0]  ;;  %v3004_v53 = vor.u32 %v3866_v27, %v3003_v26  ;;  %v3252_v58 = vor.u32 %v3928_v39, %v3251_v38 }
  0x5e   : > { %1209 = vmatpush.bf16.msra.mxu2 %v3084_v10  ;;  %v3898_v36 = vld [vmem:[%s5379_s1 + $0x184] sm:$0xf0]  ;;  %v3879_v44 = vld [vmem:[%s5379_s1 + $0xf4] sm:$0xf]  ;;  %582 = vst [vmem:[#allocation2 + $0x4] sm:$0xf] %v578_v30  ;;  %v3068_v54 = vor.u32 %v3882_v29, %v3067_v28  ;;  %v3000_v62 = vor.u32 %v3863_v42, %v2997_v43  ;;  %vm5284_vm6 = vmand %vm2142_vm4, %vm2143_vm5 }
  0x5f   : > { %1228 = vmatpush.bf16.msra.mxu3 %v3148_v14  ;;  %v3061_v45 = vld [vmem:[%s5379_s1 + $0xf8] sm:$0xf0]  ;;  %v598_v46 = vld [vmem:[%s4885_s21 + $0x3] sm:$0xff]  ;;  %v599_v47 = vld [vmem:[%s4885_s21 + $0xb] sm:$0xff]  ;;  %583 = vst [vmem:[#allocation2 + $0x18] sm:$0xf] %v579_v31  ;;  %v3132_v57 = vor.u32 %v3898_v36, %v3131_v35 }
  0x60   : > { %1172 = vmatpush.bf16.msra.mxu0 %v2948_v25  ;;  %v602_v49 = vpack.c.bf16 %v598_v46, %v598_v46  ;;  %v603_v50 = vpack.c.bf16 %v599_v47, %v599_v47  ;;  %v3895_v51 = vld [vmem:[%s5379_s1 + $0x174] sm:$0xf]  ;;  %v3125_v52 = vld [vmem:[%s5379_s1 + $0x178] sm:$0xf0]  ;;  %594 = vst [vmem:[#allocation2 + $0x8] sm:$0xf] %v590_v37  ;;  %v3064_v63 = vor.u32 %v3879_v44, %v3061_v45 }
  0x61   : > { %1191 = vmatpush.bf16.msra.mxu1 %v3012_v33  ;;  %v3243_v55 = vld [vmem:[%s5379_s1 + $0x260] sm:$0xf]  ;;  %v3926_v56 = vld [vmem:[%s5379_s1 + $0x264] sm:$0xf0]  ;;  %595 = vst [vmem:[#allocation2 + $0x1c] sm:$0xf] %v591_v41  ;;  %v3128_v3 = vor.u32 %v3895_v51, %v3125_v52 }
  0x62   : > { %1210 = vmatpush.bf16.msra.mxu2 %v3076_v34  ;;  %v3861_v59 = vld [vmem:[%s5379_s1 + $0x64] sm:$0xf]  ;;  %v2989_v60 = vld [vmem:[%s5379_s1 + $0x68] sm:$0xf0]  ;;  %606 = vst [vmem:[#allocation2 + $0xc] sm:$0xf] %v602_v49  ;;  %v3244_v10 = vor.u32 %v3926_v56, %v3243_v55 }
  0x63   : > { %1229 = vmatpush.bf16.msra.mxu3 %v3140_v40  ;;  %v3877_v61 = vld [vmem:[%s5379_s1 + $0xe4] sm:$0xf]  ;;  %v3053_v0 = vld [vmem:[%s5379_s1 + $0xe8] sm:$0xf0]  ;;  %v2899_v2 = vld [vmem:[#allocation2] sm:$0xf]  ;;  %v2992_v14 = vor.u32 %v3861_v59, %v2989_v60 }
  0x64   : > { %v3893_v1 = vld [vmem:[%s5379_s1 + $0x164] sm:$0xf]  ;;  %1173 = vmatpush.bf16.msra.mxu0 %v2940_v48  ;;  %607 = vst [vmem:[#allocation2 + $0x20] sm:$0xf] %v603_v50  ;;  %v3117_v4 = vld [vmem:[%s5379_s1 + $0x168] sm:$0xf0]  ;;  %v3056_v15 = vor.u32 %v3877_v61, %v3053_v0 }
  0x65   : > { %1192 = vmatpush.bf16.msra.mxu1 %v3004_v53  ;;  %v3841_v5 = vld [vmem:[#allocation2 + $0x10] sm:$0xf0]  ;;  %v3235_v6 = vld [vmem:[%s5379_s1 + $0x250] sm:$0xf]  ;;  %v3924_v7 = vld [vmem:[%s5379_s1 + $0x254] sm:$0xf0]  ;;  %v3120_v20 = vor.u32 %v3893_v1, %v3117_v4 }
  0x66   : > { %1211 = vmatpush.bf16.msra.mxu2 %v3068_v54  ;;  %v4997_v8 = vor.u32 %v3841_v5, %v2899_v2  ;;  %v3839_v9 = vld [vmem:[#allocation2 + $0x4] sm:$0xf]  ;;  %v3859_v11 = vld [vmem:[%s5379_s1 + $0x54] sm:$0xf]  ;;  %v2981_v12 = vld [vmem:[%s5379_s1 + $0x58] sm:$0xf0]  ;;  %v3236_v28 = vor.u32 %v3924_v7, %v3235_v6 }
  0x67   : > { %1230 = vmatpush.bf16.msra.mxu3 %v3132_v57  ;;  %v2901_v13 = vld [vmem:[#allocation2 + $0x14] sm:$0xf0]  ;;  %v3875_v16 = vld [vmem:[%s5379_s1 + $0xd4] sm:$0xf]  ;;  %v3045_v17 = vld [vmem:[%s5379_s1 + $0xd8] sm:$0xf0]  ;;  %v2984_v32 = vor.u32 %v3859_v11, %v2981_v12 }
  0x68   : > { %1242 = vmatpush.bf16.msrb.mxu0 %v3252_v58  ;;  %v5012_v18 = vor.u32 %v3839_v9, %v2901_v13  ;;  %v2907_v19 = vld [vmem:[#allocation2 + $0x8] sm:$0xf]  ;;  %v3891_v21 = vld [vmem:[%s5379_s1 + $0x154] sm:$0xf]  ;;  %v3109_v22 = vld [vmem:[%s5379_s1 + $0x158] sm:$0xf0]  ;;  %v3048_v33 = vor.u32 %v3875_v16, %v3045_v17 }
  0x69   : > { %1261 = vmatpush.bf16.msrb.mxu1 %v3000_v62  ;;  %1174 = vmatmul.bf16.vlgmr.msra.gmra.mxu0 %v4997_v8  ;;  %v3842_v23 = vld [vmem:[#allocation2 + $0x18] sm:$0xf0]  ;;  %v3227_v24 = vld [vmem:[%s5379_s1 + $0x240] sm:$0xf]  ;;  %v3922_v25 = vld [vmem:[%s5379_s1 + $0x244] sm:$0xf0]  ;;  %v3112_v37 = vor.u32 %v3891_v21, %v3109_v22 }
  0x6a   : > { %1280 = vmatpush.bf16.msrb.mxu2 %v3064_v63  ;;  %1193 = vmatmul.bf16.vlgmr.msra.gmra.mxu1 %v5012_v18  ;;  %v5027_v26 = vor.u32 %v3842_v23, %v2907_v19  ;;  %v3840_v27 = vld [vmem:[#allocation2 + $0xc] sm:$0xf]  ;;  %v3857_v29 = vld [vmem:[%s5379_s1 + $0x44] sm:$0xf]  ;;  %v2973_v30 = vld [vmem:[%s5379_s1 + $0x48] sm:$0xf0]  ;;  %v3228_v41 = vor.u32 %v3922_v25, %v3227_v24 }
  0x6b   : > { %1299 = vmatpush.bf16.msrb.mxu3 %v3128_v3  ;;  %v2909_v31 = vld [vmem:[#allocation2 + $0x1c] sm:$0xf0]  ;;  %v3873_v34 = vld [vmem:[%s5379_s1 + $0xc4] sm:$0xf]  ;;  %v3037_v35 = vld [vmem:[%s5379_s1 + $0xc8] sm:$0xf0]  ;;  %v2976_v52 = vor.u32 %v3857_v29, %v2973_v30 }
  0x6c   : > { %1243 = vmatpush.bf16.msrb.mxu0 %v3244_v10  ;;  %1212 = vmatmul.bf16.vlgmr.msra.gmra.mxu2 %v5027_v26  ;;  %v5042_v36 = vor.u32 %v3840_v27, %v2909_v31  ;;  %v3889_v38 = vld [vmem:[%s5379_s1 + $0x144] sm:$0xf]  ;;  %v3101_v39 = vld [vmem:[%s5379_s1 + $0x148] sm:$0xf0]  ;;  %v564_v40 = vld [vmem:[%s4885_s21 + $0x10] sm:$0xff]  ;;  %v3040_v53 = vor.u32 %v3873_v34, %v3037_v35  ;;  %s554_s6 = sand.u32 1, %s4513_s26  }
  0x6d   : > { %1262 = vmatpush.bf16.msrb.mxu1 %v2992_v14  ;;  %v565_v42 = vld [vmem:[%s4885_s21 + $0x18] sm:$0xf]  ;;  %v568_v43 = vpack.c.bf16 %v564_v40, %v564_v40  ;;  %v3219_v51 = vld [vmem:[%s5379_s1 + $0x230] sm:$0xf]  ;;  %v3855_v56 = vld [vmem:[%s5379_s1 + $0x34] sm:$0xf]  ;;  %v3104_v57 = vor.u32 %v3889_v38, %v3101_v39 }
  0x6e   : > { %1281 = vmatpush.bf16.msrb.mxu2 %v3056_v15  ;;  %v576_v44 = vld [vmem:[%s4885_s21 + $0x11] sm:$0xff]  ;;  %v577_v45 = vld [vmem:[%s4885_s21 + $0x19] sm:$0xf]  ;;  %1231 = vmatmul.bf16.vlgmr.msra.gmra.mxu3 %v5042_v36  ;;  %v569_v46 = vpack.c.bf16 %v565_v42, %v565_v42  ;;  %v3211_v7 = vld [vmem:[%s5379_s1 + $0x220] sm:$0xf]  ;;  %s2741_s15 = sshll.u32 %s2737_s17, 4  ;;  %s2742_s15 = int_to_ptr.hbm [resolvable:$true] %s2741_s15 }
  0x6f   : > { %1300 = vmatpush.bf16.msrb.mxu3 %v3120_v20  ;;  %v580_v47 = vpack.c.bf16 %v576_v44, %v576_v44  ;;  %v581_v48 = vpack.c.bf16 %v577_v45, %v577_v45  ;;  %v588_v49 = vld [vmem:[%s4885_s21 + $0x12] sm:$0xff]  ;;  %v589_v50 = vld [vmem:[%s4885_s21 + $0x1a] sm:$0xf]  ;;  %572 = vst [vmem:[#allocation2 + $0x28] sm:$0xf] %v568_v43  ;;  %v610_v16 = vld [vmem:[%s4885_s21 + $0x4] sm:$0xff] }
  0x70   : > { %1244 = vmatpush.bf16.msrb.mxu0 %v3236_v28  ;;  %v592_v54 = vpack.c.bf16 %v588_v49, %v588_v49  ;;  %v3920_v55 = vld [vmem:[%s5379_s1 + $0x234] sm:$0xf0]  ;;  %573 = vst [vmem:[#allocation2 + $0x3c] sm:$0x3] %v569_v46  ;;  %v593_v58 = vpack.c.bf16 %v589_v50, %v589_v50  ;;  %v2965_v59 = vld [vmem:[%s5379_s1 + $0x38] sm:$0xf0]  ;;  %v614_v43 = vpack.c.bf16 %v610_v16, %v610_v16 }
  0x71   : > { %1263 = vmatpush.bf16.msrb.mxu1 %v2984_v32  ;;  %v3871_v60 = vld [vmem:[%s5379_s1 + $0xb4] sm:$0xf]  ;;  %584 = vst [vmem:[#allocation2 + $0x2c] sm:$0xf] %v580_v47  ;;  %v3029_v61 = vld [vmem:[%s5379_s1 + $0xb8] sm:$0xf0]  ;;  %v3220_v63 = vor.u32 %v3920_v55, %v3219_v51  ;;  %v2968_v3 = vor.u32 %v3855_v56, %v2965_v59 }
  0x72   : > { %1282 = vmatpush.bf16.msrb.mxu2 %v3048_v33  ;;  %v600_v62 = vld [vmem:[%s4885_s21 + $0x13] sm:$0xff]  ;;  %585 = vst [vmem:[#allocation2 + $0x40] sm:$0x3] %v581_v48  ;;  %v601_v0 = vld [vmem:[%s4885_s21 + $0x1b] sm:$0xf]  ;;  %v3032_v4 = vor.u32 %v3871_v60, %v3029_v61  ;;  %s2729_s22 = scalar_lea.sflag [#allocation9], %s554_s6 }
  0x73   : > { %1301 = vmatpush.bf16.msrb.mxu3 %v3112_v37  ;;  %v604_v1 = vpack.c.bf16 %v600_v62, %v600_v62  ;;  %v3887_v2 = vld [vmem:[%s5379_s1 + $0x134] sm:$0xf]  ;;  %596 = vst [vmem:[#allocation2 + $0x30] sm:$0xf] %v592_v54  ;;  %v605_v5 = vpack.c.bf16 %v601_v0, %v601_v0  ;;  %v3093_v6 = vld [vmem:[%s5379_s1 + $0x138] sm:$0xf0] }
  0x74   : > { %1245 = vmatpush.bf16.msrb.mxu0 %v3228_v41  ;;  %597 = vst [vmem:[#allocation2 + $0x44] sm:$0x3] %v593_v58  ;;  %v3096_v9 = vor.u32 %v3887_v2, %v3093_v6  ;;  %v3918_v10 = vld [vmem:[%s5379_s1 + $0x224] sm:$0xf0]  ;;  %v3853_v11 = vld [vmem:[%s5379_s1 + $0x24] sm:$0xf] }
  0x75   : > { %1264 = vmatpush.bf16.msrb.mxu1 %v2976_v52  ;;  %608 = vst [vmem:[#allocation2 + $0x34] sm:$0xf] %v604_v1  ;;  %v2957_v12 = vld [vmem:[%s5379_s1 + $0x28] sm:$0xf0]  ;;  %v3869_v13 = vld [vmem:[%s5379_s1 + $0xa4] sm:$0xf]  ;;  %v3212_v19 = vor.u32 %v3918_v10, %v3211_v7 }
  0x76   : > { %1283 = vmatpush.bf16.msrb.mxu2 %v3040_v53  ;;  %v2919_v14 = vld [vmem:[#allocation2 + $0x28] sm:$0xf]  ;;  %609 = vst [vmem:[#allocation2 + $0x48] sm:$0x3] %v605_v5  ;;  %v3021_v15 = vld [vmem:[%s5379_s1 + $0xa8] sm:$0xf0]  ;;  %v2960_v20 = vor.u32 %v3853_v11, %v2957_v12 }
  0x77   : > { %1302 = vmatpush.bf16.msrb.mxu3 %v3104_v57  ;;  %v3846_v17 = vld [vmem:[#allocation2 + $0x38] sm:$0x30]  ;;  %v3085_v22 = vld [vmem:[%s5379_s1 + $0x128] sm:$0xf0]  ;;  %v3024_v25 = vor.u32 %v3869_v13, %v3021_v15  ;;  %v3203_v27 = vld [vmem:[%s5379_s1 + $0x210] sm:$0xf] }
  0x78   : > { %1246 = vmatpush.bf16.msrb.mxu0 %v3220_v63  ;;  %v3885_v21 = vld [vmem:[%s5379_s1 + $0x124] sm:$0xf]  ;;  %v5108_v23 = vor.u32 %v3846_v17, %v2919_v14  ;;  %v3844_v24 = vld [vmem:[#allocation2 + $0x2c] sm:$0xf]  ;;  %v3916_v28 = vld [vmem:[%s5379_s1 + $0x214] sm:$0xf0] }
  0x79   : > { %1265 = vmatpush.bf16.msrb.mxu1 %v2968_v3  ;;  %v2921_v29 = vld [vmem:[#allocation2 + $0x3c] sm:$0x30]  ;;  %v3088_v30 = vor.u32 %v3885_v21, %v3085_v22  ;;  %v3851_v31 = vld [vmem:[%s5379_s1 + $0x14] sm:$0xf]  ;;  %v2949_v32 = vld [vmem:[%s5379_s1 + $0x18] sm:$0xf0]  ;;  %v3204_v39 = vor.u32 %v3916_v28, %v3203_v27 }
  0x7a   : > { %1284 = vmatpush.bf16.msrb.mxu2 %v3032_v4  ;;  %1179 = vmatmul.bf16.gmra.mxu0 %v5108_v23  ;;  %v5123_v33 = vor.u32 %v3844_v24, %v2921_v29  ;;  %v2927_v34 = vld [vmem:[#allocation2 + $0x30] sm:$0xf]  ;;  %v3867_v35 = vld [vmem:[%s5379_s1 + $0x94] sm:$0xf]  ;;  %v3013_v37 = vld [vmem:[%s5379_s1 + $0x98] sm:$0xf0]  ;;  %v2952_v40 = vor.u32 %v3851_v31, %v2949_v32 }
  0x7b   : > { %1303 = vmatpush.bf16.msrb.mxu3 %v3096_v9  ;;  %v3847_v38 = vld [vmem:[#allocation2 + $0x40] sm:$0x30]  ;;  %v3883_v41 = vld [vmem:[%s5379_s1 + $0x114] sm:$0xf]  ;;  %v3077_v42 = vld [vmem:[%s5379_s1 + $0x118] sm:$0xf0]  ;;  %v3016_v46 = vor.u32 %v3867_v35, %v3013_v37 }
  0x7c   : > { %1247 = vmatpush.bf16.msrb.mxu0 %v3212_v19  ;;  %1198 = vmatmul.bf16.gmra.mxu1 %v5123_v33  ;;  %v5138_v44 = vor.u32 %v3847_v38, %v2927_v34  ;;  %v3845_v45 = vld [vmem:[#allocation2 + $0x34] sm:$0xf]  ;;  %v3195_v47 = vld [vmem:[%s5379_s1 + $0x200] sm:$0xf]  ;;  %v3914_v48 = vld [vmem:[%s5379_s1 + $0x204] sm:$0xf0]  ;;  %v3080_v50 = vor.u32 %v3883_v41, %v3077_v42 }
  0x7d   : > { %1266 = vmatpush.bf16.msrb.mxu1 %v2960_v20  ;;  %v2929_v49 = vld [vmem:[#allocation2 + $0x44] sm:$0x30]  ;;  %v3849_v51 = vld [vmem:[%s5379_s1 + $0x4] sm:$0xf]  ;;  %v2941_v52 = vld [vmem:[%s5379_s1 + $0x8] sm:$0xf0]  ;;  %v3196_v57 = vor.u32 %v3914_v48, %v3195_v47 }
  0x7e   : > { %1285 = vmatpush.bf16.msrb.mxu2 %v3024_v25  ;;  %v5153_v53 = vor.u32 %v3845_v45, %v2929_v49  ;;  %v3865_v54 = vld [vmem:[%s5379_s1 + $0x84] sm:$0xf]  ;;  %v3005_v55 = vld [vmem:[%s5379_s1 + $0x88] sm:$0xf0]  ;;  %v2944_v58 = vor.u32 %v3849_v51, %v2941_v52  ;;  %618 = vst [vmem:[#allocation2 + $0x10] sm:$0xf] %v614_v43 }
  0x7f   : > { %1304 = vmatpush.bf16.msrb.mxu3 %v3088_v30  ;;  %1217 = vmatmul.bf16.gmra.mxu2 %v5138_v44  ;;  %v3881_v56 = vld [vmem:[%s5379_s1 + $0x104] sm:$0xf]  ;;  %v3069_v59 = vld [vmem:[%s5379_s1 + $0x108] sm:$0xf0]  ;;  %v612_v61 = vld [vmem:[%s4885_s21 + $0x14] sm:$0xff]  ;;  %v3008_v62 = vor.u32 %v3865_v54, %v3005_v55  ;;  %s4453_s2 = sshra.s32 %s2742_s15, 4  ;;  %s4454_s2 = int_to_ptr.hbm [resolvable:$true] %s4453_s2 }
  0x80   : > { %1248 = vmatpush.bf16.msrb.mxu0 %v3204_v39  ;;  %v611_v60 = vld [vmem:[%s4885_s21 + $0xc] sm:$0xff]  ;;  %1236 = vmatmul.bf16.gmra.mxu3 %v5153_v53  ;;  %v3911_v0 = vld [vmem:[%s5379_s1 + $0x1f4] sm:$0xf]  ;;  %v3189_v1 = vld [vmem:[%s5379_s1 + $0x1f8] sm:$0xf0]  ;;  %v3072_v3 = vor.u32 %v3881_v56, %v3069_v59  ;;  %v616_v12 = vpack.c.bf16 %v612_v61, %v612_v61  ;;  %s4455_s16 = scalar_lea.hbm %s4454_s2, 1  ;;  %p4460_p3 = scmp.lt.s32.totalorder %s4454_s2, %s5391_s13 }
  0x81   : > { %1267 = vmatpush.bf16.msrb.mxu1 %v2952_v40  ;;  %v615_v63 = vpack.c.bf16 %v611_v60, %v611_v60  ;;  %v3927_v2 = vld [vmem:[%s5379_s1 + $0x274] sm:$0xf]  ;;  %v3192_v4 = vor.u32 %v3911_v0, %v3189_v1  ;;  %v3253_v5 = vld [vmem:[%s5379_s1 + $0x278] sm:$0xf0]  ;;  %v3909_v6 = vld [vmem:[%s5379_s1 + $0x1e4] sm:$0xf]  ;;  %p4456_p0 = scmp.ne.s32.totalorder %s4454_s2, %s4455_s16 }
  0x82   : > { %1286 = vmatpush.bf16.msrb.mxu2 %v3016_v46  ;;  %v3181_v7 = vld [vmem:[%s5379_s1 + $0x1e8] sm:$0xf0]  ;;  %v3256_v9 = vor.u32 %v3927_v2, %v3253_v5  ;;  %v3925_v10 = vld [vmem:[%s5379_s1 + $0x264] sm:$0xf]  ;;  %v3907_v15 = vld [vmem:[%s5379_s1 + $0x1d4] sm:$0xf] }
  0x83   : > { %1305 = vmatpush.bf16.msrb.mxu3 %v3080_v50  ;;  %619 = vst [vmem:[#allocation2 + $0x24] sm:$0xf] %v615_v63  ;;  %v3245_v11 = vld [vmem:[%s5379_s1 + $0x268] sm:$0xf0]  ;;  %v3184_v13 = vor.u32 %v3909_v6, %v3181_v7  ;;  %v3173_v16 = vld [vmem:[%s5379_s1 + $0x1d8] sm:$0xf0]  ;;  %p4457_p1 = pnand %p4456_p0, %p4643_p5 }
  0x84   : > { %1249 = vmatpush.bf16.msrb.mxu0 %v3196_v57  ;;  %v3248_v14 = vor.u32 %v3925_v10, %v3245_v11  ;;  %v613_v17 = vld [vmem:[%s4885_s21 + $0x1c] sm:$0xf]  ;;  %v3923_v19 = vld [vmem:[%s5379_s1 + $0x254] sm:$0xf]  ;;  %620 = vst [vmem:[#allocation2 + $0x38] sm:$0xf] %v616_v12  ;;  %v3176_v25 = vor.u32 %v3907_v15, %v3173_v16 }
  0x85   : > { %1268 = vmatpush.bf16.msrb.mxu1 %v2944_v58  ;;  %v3237_v20 = vld [vmem:[%s5379_s1 + $0x258] sm:$0xf0]  ;;  %v617_v21 = vpack.c.bf16 %v613_v17, %v613_v17  ;;  %v2915_v22 = vld [vmem:[#allocation2 + $0x10] sm:$0xf]  ;;  %v3905_v28 = vld [vmem:[%s5379_s1 + $0x1c4] sm:$0xf]  ;;  %p4458_p2 = pneg %p4457_p1 }
  0x86   : > { %1287 = vmatpush.bf16.msrb.mxu2 %v3008_v62  ;;  %v3240_v27 = vor.u32 %v3923_v19, %v3237_v20  ;;  %v3165_v30 = vld [vmem:[%s5379_s1 + $0x1c8] sm:$0xf0]  ;;  %v3921_v31 = vld [vmem:[%s5379_s1 + $0x244] sm:$0xf]  ;;  %v3903_v37 = vld [vmem:[%s5379_s1 + $0x1b4] sm:$0xf] }
  0x87   : > { %1306 = vmatpush.bf16.msrb.mxu3 %v3072_v3  ;;  %621 = vst [vmem:[#allocation2 + $0x4c] sm:$0x3] %v617_v21  ;;  %v3229_v32 = vld [vmem:[%s5379_s1 + $0x248] sm:$0xf0]  ;;  %v3168_v34 = vor.u32 %v3905_v28, %v3165_v30  ;;  %v3157_v38 = vld [vmem:[%s5379_s1 + $0x1b8] sm:$0xf0] }
  0x88   : > { %1318 = vmatpush.bf16.msra.mxu0 %v3192_v4  ;;  %v3232_v35 = vor.u32 %v3921_v31, %v3229_v32  ;;  %v3919_v39 = vld [vmem:[%s5379_s1 + $0x234] sm:$0xf]  ;;  %v3160_v40 = vor.u32 %v3903_v37, %v3157_v38  ;;  %v3149_v42 = vld [vmem:[%s5379_s1 + $0x1a8] sm:$0xf0]  ;;  %v3917_v43 = vld [vmem:[%s5379_s1 + $0x224] sm:$0xf] }
  0x89   : > { %1337 = vmatpush.bf16.msra.mxu1 %v3256_v9  ;;  %v3899_v49 = vld [vmem:[%s5379_s1 + $0x194] sm:$0xf]  ;;  %v3141_v50 = vld [vmem:[%s5379_s1 + $0x198] sm:$0xf0]  ;;  %v3897_v57 = vld [vmem:[%s5379_s1 + $0x184] sm:$0xf] }
  0x8a   : > { %v3843_v24 = vld [vmem:[#allocation2 + $0x20] sm:$0xf0]  ;;  %v3915_v51 = vld [vmem:[%s5379_s1 + $0x214] sm:$0xf]  ;;  %v3205_v52 = vld [vmem:[%s5379_s1 + $0x218] sm:$0xf0]  ;;  %v3144_v55 = vor.u32 %v3899_v49, %v3141_v50 }
  0x8b   : > { %v2916_v29 = vor.u32 %v3843_v24, %v2915_v22  ;;  %v2935_v45 = vld [vmem:[#allocation2 + $0x38] sm:$0xf]  ;;  %v3208_v56 = vor.u32 %v3915_v51, %v3205_v52  ;;  %v3133_v58 = vld [vmem:[%s5379_s1 + $0x188] sm:$0xf0]  ;;  %v3913_v59 = vld [vmem:[%s5379_s1 + $0x204] sm:$0xf] }
  0x8c   : > { %1319 = vmatpush.bf16.msra.mxu0 %v3184_v13  ;;  %1269 = vmatmul.bf16.vlgmr.msrb.gmra.mxu1 %v4997_v8  ;;  %v3221_v8 = vld [vmem:[%s5379_s1 + $0x238] sm:$0xf0]  ;;  %v3197_v60 = vld [vmem:[%s5379_s1 + $0x208] sm:$0xf0]  ;;  %v3136_v61 = vor.u32 %v3897_v57, %v3133_v58  ;;  %s555_s21 = scalar_lea.vmem [#allocation21], %s554_s6  ;;  %s4459_s29 = scalar_lea.hbm %s5391_s13, 2 }
  0x8d   : > { %1338 = vmatpush.bf16.msra.mxu1 %v3248_v14  ;;  %1250 = vmatmul.bf16.vlgmr.msrb.gmra.mxu0 %v2916_v29  ;;  %v3224_v41 = vor.u32 %v3919_v39, %v3221_v8  ;;  %v3200_v62 = vor.u32 %v3913_v59, %v3197_v60  ;;  %s2739_s3 = sshll.u32 %s555_s21, 4  ;;  %p4461_p4 = scmp.lt.s32.totalorder %s4459_s29, %s4455_s16  ;;  %s2740_s3 = int_to_ptr.vmem [resolvable:$true] %s2739_s3 }
  0x8e   : > { %v3848_v46 = vld [vmem:[#allocation2 + $0x48] sm:$0x30] }
  0x8f   : > { %1288 = vmatmul.bf16.vlgmr.msrb.gmra.mxu2 %v5012_v18  ;;  %v3901_v18 = vld [vmem:[%s5379_s1 + $0x1a4] sm:$0xf]  ;;  %v2936_v54 = vor.u32 %v3848_v46, %v2935_v45  ;;  %p4462_p7 = por %p4461_p4, %p4460_p3 }
  0x90   : > { %1320 = vmatpush.bf16.msra.mxu0 %v3176_v25  ;;  %1307 = vmatmul.bf16.vlgmr.msrb.gmra.mxu3 %v5027_v26  ;;  %v3213_v26 = vld [vmem:[%s5379_s1 + $0x228] sm:$0xf0]  ;;  %v3152_v47 = vor.u32 %v3901_v18, %v3149_v42 }
  0x91   : > { %1339 = vmatpush.bf16.msra.mxu1 %v3240_v27  ;;  %v3216_v48 = vor.u32 %v3917_v43, %v3213_v26  ;;  %p4463_p8 = pnand %p4462_p7, %p4458_p2 }
  0x94   : > { %1321 = vmatpush.bf16.msra.mxu0 %v3168_v34 }
  0x95   : > { %1340 = vmatpush.bf16.msra.mxu1 %v3232_v35 }
  0x98   : > { %1322 = vmatpush.bf16.msra.mxu0 %v3160_v40 }
  0x99   : > { %1341 = vmatpush.bf16.msra.mxu1 %v3224_v41 }
  0x9c   : > { %1323 = vmatpush.bf16.msra.mxu0 %v3152_v47  ;;  %1274 = vmatmul.bf16.gmra.mxu1 %v5108_v23 }
  0x9d   : > { %1342 = vmatpush.bf16.msra.mxu1 %v3216_v48  ;;  %1255 = vmatmul.bf16.gmra.mxu0 %v2936_v54 }
  0x9f   : > { %1293 = vmatmul.bf16.gmra.mxu2 %v5123_v33 }
  0xa0   : > { %1324 = vmatpush.bf16.msra.mxu0 %v3144_v55  ;;  %1312 = vmatmul.bf16.gmra.mxu3 %v5138_v44 }
  0xa1   : > { %1343 = vmatpush.bf16.msra.mxu1 %v3208_v56 }
  0xa4   : > { %1325 = vmatpush.bf16.msra.mxu0 %v3136_v61 }
  0xa5   : > { %1344 = vmatpush.bf16.msra.mxu1 %v3200_v62 }
  0xac   : > { %1345 = vmatmul.bf16.vlgmr.msra.gmra.mxu1 %v2916_v29 }
  0xad   : > { %1326 = vmatmul.bf16.vlgmr.msra.gmra.mxu0 %v5042_v36 }
  0xbc   : > { %1350 = vmatmul.bf16.gmra.mxu1 %v2936_v54 }
  0xbd   : > { %1331 = vmatmul.bf16.gmra.mxu0 %v5153_v53 }
  0xe6   : > { %v1175_v63 = vpop.f32.mrf.mxu0 }
  0xe7   : > { %v1194_v0 = vpop.f32.mrf.mxu1 }
  0xe8   : > { %v1195_v1 = vadd.f32 %v1194_v0, %v1175_v63 }
  0xee   : > { %v1177_v23 = vpop.f32.mrf.mxu0 }
  0xef   : > { %v1196_v2 = vpop.f32.mrf.mxu1  ;;  %v1213_v4 = vpop.f32.mrf.mxu2 }
  0xf0   : > { %v1197_v3 = vadd.f32 %v1196_v2, %v1177_v23  ;;  %v1214_v35 = vadd.f32 %v1213_v4, %v1195_v1 }
  0xf1   : > { %v1232_v5 = vpop.f32.mrf.mxu3 }
  0xf2   : > { %v1233_v41 = vadd.f32 %v1232_v5, %v1214_v35  ;;  %v3345_v5 = vld [vmem:[#allocation12 + $0x70] sm:$0xf] }
  0xf7   : > { %v1180_v6 = vpop.f32.mrf.mxu0  ;;  %v1215_v44 = vpop.f32.mrf.mxu2 }
  0xf8   : > { %v1216_v37 = vadd.f32 %v1215_v44, %v1197_v3 }
  0xf9   : > { %v1199_v33 = vpop.f32.mrf.mxu1  ;;  %v1234_v10 = vpop.f32.mrf.mxu3 }
  0xfa   : > { %v1200_v7 = vadd.f32 %v1199_v33, %v1180_v6  ;;  %v1235_v18 = vadd.f32 %v1234_v10, %v1216_v37  ;;  %v3951_v6 = vld [vmem:[#allocation12 + $0x74] sm:$0xf0]  ;;  %v3409_v33 = vld [vmem:[#allocation12 + $0xf0] sm:$0xf]  ;;  %v3385_v37 = vld [vmem:[#allocation12 + $0xc0] sm:$0xf] }
  0xfb   : > { %v3346_v10 = vor.u32 %v3951_v6, %v3345_v5  ;;  %v3297_v5 = vld [vmem:[#allocation12 + $0x10] sm:$0xf]  ;;  %v3939_v6 = vld [vmem:[#allocation12 + $0x14] sm:$0xf0] }
  0xfd   : > { %1960 = vmatpush.bf16.msra.mxu3 %v3346_v10  ;;  %v3955_v10 = vld [vmem:[#allocation12 + $0x94] sm:$0xf0] }
  0xff   : > { %v1182_v9 = vpop.f32.mrf.mxu0 }
 0x101   : > { %v1201_v11 = vpop.f32.mrf.mxu1 }
 0x102   : > { %v1218_v36 = vpop.f32.mrf.mxu2  ;;  %v1202_v57 = vadd.f32 %v1201_v11, %v1182_v9  ;;  %v3949_v9 = vld [vmem:[#allocation12 + $0x64] sm:$0xf0] }
 0x103   : > { %v1237_v53 = vpop.f32.mrf.mxu3  ;;  %v1219_v61 = vadd.f32 %v1218_v36, %v1200_v7  ;;  %v3401_v36 = vld [vmem:[#allocation12 + $0xe0] sm:$0xf] }
 0x105   : > { %v1238_v23 = vadd.f32 %v1237_v53, %v1219_v61  ;;  %v3957_v61 = vld [vmem:[#allocation12 + $0xa4] sm:$0xf0] }
 0x109   : > { %v1270_v13 = vpop.f32.mrf.mxu1 }
 0x10a   : > { %v1251_v12 = vpop.f32.mrf.mxu0  ;;  %v1220_v14 = vpop.f32.mrf.mxu2 }
 0x10b   : > { %v1239_v17 = vpop.f32.mrf.mxu3  ;;  %v1252_v46 = vadd.f32 %v1251_v12, %v1233_v41  ;;  %v1221_v62 = vadd.f32 %v1220_v14, %v1202_v57  ;;  %v3967_v12 = vld [vmem:[#allocation12 + $0xf4] sm:$0xf0]  ;;  %v3965_v14 = vld [vmem:[#allocation12 + $0xe4] sm:$0xf0]  ;;  %v3537_v41 = vld [vmem:[#allocation12 + $0x1f0] sm:$0xf] }
 0x10c   : > { %v3410_v7 = vor.u32 %v3967_v12, %v3409_v33  ;;  %v3305_v57 = vld [vmem:[#allocation12 + $0x20] sm:$0xf]  ;;  %v3298_v33 = vor.u32 %v3939_v6, %v3297_v5  ;;  %v3944_v6 = vld [vmem:[#allocation12 + $0x44] sm:$0xf] }
 0x10d   : > { %v1240_v2 = vadd.f32 %v1239_v17, %v1221_v62  ;;  %v3449_v12 = vld [vmem:[#allocation12 + $0x140] sm:$0xf] }
 0x10e   : > { %1974 = vmatpush.bf16.msrb.mxu0 %v3410_v7 }
 0x111   : > { %v1272_v16 = vpop.f32.mrf.mxu1 }
 0x112   : > { %v1253_v15 = vpop.f32.mrf.mxu0  ;;  %v1289_v21 = vpop.f32.mrf.mxu2 }
 0x113   : > { %v1308_v22 = vpop.f32.mrf.mxu3  ;;  %v1290_v28 = vadd.f32 %v1289_v21, %v1270_v13  ;;  %v1254_v47 = vadd.f32 %v1253_v15, %v1235_v18  ;;  %v3337_v13 = vld [vmem:[#allocation12 + $0x60] sm:$0xf]  ;;  %v3402_v21 = vor.u32 %v3965_v14, %v3401_v36  ;;  %v3999_v18 = vld [vmem:[#allocation12 + $0x1f4] sm:$0xf0]  ;;  %v3937_v14 = vld [vmem:[#allocation12 + $0x4] sm:$0xf0] }
 0x114   : > { %v3289_v36 = vld [vmem:[#allocation12] sm:$0xf] }
 0x115   : > { %v1309_v32 = vadd.f32 %v1308_v22, %v1290_v28  ;;  %1975 = vmatpush.bf16.msrb.mxu0 %v3402_v21  ;;  %v3947_v28 = vld [vmem:[#allocation12 + $0x54] sm:$0xf0]  ;;  %v3441_v21 = vld [vmem:[#allocation12 + $0x130] sm:$0xf] }
 0x119   : > { %v1275_v20 = vpop.f32.mrf.mxu1 }
 0x11a   : > { %v1256_v19 = vpop.f32.mrf.mxu0  ;;  %v1291_v27 = vpop.f32.mrf.mxu2 }
 0x11b   : > { %v1310_v29 = vpop.f32.mrf.mxu3  ;;  %v1292_v34 = vadd.f32 %v1291_v27, %v1272_v16  ;;  %v1257_v11 = vadd.f32 %v1256_v19, %v1238_v23  ;;  %v3929_v27 = vld [vmem:[#allocation7] sm:$0xff]  ;;  %v3930_v19 = vld [vmem:[#allocation7 + $0x8] sm:$0xff] }
 0x11c   : > { %v3521_v23 = vld [vmem:[#allocation12 + $0x1d0] sm:$0xf] }
 0x11d   : > { %v1311_v8 = vadd.f32 %v1310_v29, %v1292_v34  ;;  %v3393_v29 = vld [vmem:[#allocation12 + $0xd0] sm:$0xf]  ;;  %v3945_v34 = vld [vmem:[#allocation12 + $0x44] sm:$0xf0] }
 0x121   : > { %v1277_v25 = vpop.f32.mrf.mxu1 }
 0x122   : > { %v1258_v24 = vpop.f32.mrf.mxu0  ;;  %v1294_v39 = vpop.f32.mrf.mxu2 }
 0x123   : > { %v1313_v45 = vpop.f32.mrf.mxu3  ;;  %v1295_v51 = vadd.f32 %v1294_v39, %v1275_v20  ;;  %v1259_v15 = vadd.f32 %v1258_v24, %v1240_v2  ;;  %v3338_v20 = vor.u32 %v3949_v9, %v3337_v13  ;;  %v3329_v24 = vld [vmem:[#allocation12 + $0x50] sm:$0xf]  ;;  %v3977_v9 = vld [vmem:[#allocation12 + $0x144] sm:$0xf0] }
 0x124   : > { %v3473_v39 = vld [vmem:[#allocation12 + $0x170] sm:$0xf] }
 0x125   : > { %v1314_v58 = vadd.f32 %v1313_v45, %v1295_v51  ;;  %1961 = vmatpush.bf16.msra.mxu3 %v3338_v20  ;;  %v3313_v45 = vld [vmem:[#allocation12 + $0x30] sm:$0xf]  ;;  %v3981_v51 = vld [vmem:[#allocation12 + $0x164] sm:$0xf0]  ;;  %v3353_v20 = vld [vmem:[#allocation12 + $0x80] sm:$0xf] }
 0x129   : > { %v1346_v31 = vpop.f32.mrf.mxu1 }
 0x12a   : > { %v1327_v30 = vpop.f32.mrf.mxu0  ;;  %v1296_v54 = vpop.f32.mrf.mxu2 }
 0x12b   : > { %v1328_v38 = vadd.f32 %v1327_v30, %v1309_v32  ;;  %v1297_v59 = vadd.f32 %v1296_v54, %v1277_v25  ;;  %v1315_v60 = vpop.f32.mrf.mxu3  ;;  %v3330_v30 = vor.u32 %v3947_v28, %v3329_v24  ;;  %v3321_v32 = vld [vmem:[#allocation12 + $0x40] sm:$0xf]  ;;  %v3991_v24 = vld [vmem:[#allocation12 + $0x1b4] sm:$0xf0]  ;;  %v3601_v28 = vld [vmem:[#allocation12 + $0x270] sm:$0xf] }
 0x12d   : > { %v1347_v42 = vadd.f32 %v1346_v31, %v1328_v38  ;;  %v1316_v0 = vadd.f32 %v1315_v60, %v1297_v59  ;;  %v3963_v31 = vld [vmem:[#allocation12 + $0xd4] sm:$0xf0]  ;;  %v3961_v38 = vld [vmem:[#allocation12 + $0xc4] sm:$0xf0]  ;;  %1962 = vmatpush.bf16.msra.mxu3 %v3330_v30  ;;  %v3369_v60 = vld [vmem:[#allocation12 + $0xa0] sm:$0xf] }
 0x12e   : > { %v3394_v35 = vor.u32 %v3963_v31, %v3393_v29  ;;  %v3941_v59 = vld [vmem:[#allocation12 + $0x24] sm:$0xf0]  ;;  %v4015_v30 = vld [vmem:[#allocation12 + $0x274] sm:$0xf0]  ;;  %v3950_v31 = vld [vmem:[#allocation12 + $0x74] sm:$0xf] }
 0x12f   : > { %v1356_v49 = vmax.f32 %v1252_v46, %v1347_v42  ;;  %v3386_v42 = vor.u32 %v3961_v38, %v3385_v37  ;;  %v3943_v46 = vld [vmem:[#allocation12 + $0x34] sm:$0xf0]  ;;  %v3306_v62 = vor.u32 %v3941_v59, %v3305_v57  ;;  %v3433_v38 = vld [vmem:[#allocation12 + $0x120] sm:$0xf]  ;;  %v3331_v59 = vld [vmem:[#allocation12 + $0x58] sm:$0xf0] }
 0x130   : > { %1976 = vmatpush.bf16.msrb.mxu0 %v3394_v35 }
 0x131   : > { %v1348_v26 = vpop.f32.mrf.mxu1 }
 0x132   : > { %v1329_v40 = vpop.f32.mrf.mxu0 }
 0x133   : > { %v1330_v43 = vadd.f32 %v1329_v40, %v1311_v8  ;;  %v3322_v8 = vor.u32 %v3945_v34, %v3321_v32  ;;  %v3983_v40 = vld [vmem:[#allocation12 + $0x174] sm:$0xf0]  ;;  %v3347_v32 = vld [vmem:[#allocation12 + $0x78] sm:$0xf0]  ;;  %v3602_v34 = vor.u32 %v4015_v30, %v3601_v28  ;;  %v4005_v30 = vld [vmem:[#allocation12 + $0x224] sm:$0xf0] }
 0x134   : > { %1977 = vmatpush.bf16.msrb.mxu0 %v3386_v42  ;;  %v3350_v35 = vor.u32 %v3950_v31, %v3347_v32  ;;  %v4013_v42 = vld [vmem:[#allocation12 + $0x264] sm:$0xf0]  ;;  %v3940_v31 = vld [vmem:[#allocation12 + $0x24] sm:$0xf] }
 0x135   : > { %v1349_v48 = vadd.f32 %v1348_v26, %v1330_v43  ;;  %v3474_v43 = vor.u32 %v3983_v40, %v3473_v39  ;;  %v3538_v26 = vor.u32 %v3999_v18, %v3537_v41  ;;  %1963 = vmatpush.bf16.msra.mxu3 %v3322_v8  ;;  %v3973_v39 = vld [vmem:[#allocation12 + $0x124] sm:$0xf0]  ;;  %v3497_v8 = vld [vmem:[#allocation12 + $0x1a0] sm:$0xf] }
 0x136   : > { %v3434_v40 = vor.u32 %v3973_v39, %v3433_v38  ;;  %v3989_v41 = vld [vmem:[#allocation12 + $0x1a4] sm:$0xf0]  ;;  %v3593_v18 = vld [vmem:[#allocation12 + $0x260] sm:$0xf]  ;;  %v3962_v38 = vld [vmem:[#allocation12 + $0xd4] sm:$0xf] }
 0x137   : > { %v1357_v50 = vmax.f32 %v1254_v47, %v1349_v48  ;;  %1988 = vmatpush.bf16.msrb.mxu1 %v3474_v43  ;;  %v3377_v47 = vld [vmem:[#allocation12 + $0xb0] sm:$0xf]  ;;  %v3314_v48 = vor.u32 %v3943_v46, %v3313_v45  ;;  %v3498_v43 = vor.u32 %v3989_v41, %v3497_v8  ;;  %v3948_v45 = vld [vmem:[#allocation12 + $0x64] sm:$0xf]  ;;  %v3339_v46 = vld [vmem:[#allocation12 + $0x68] sm:$0xf0] }
 0x138   : > { %v3395_v39 = vld [vmem:[#allocation12 + $0xd8] sm:$0xf0]  ;;  %v3978_v41 = vld [vmem:[#allocation12 + $0x154] sm:$0xf] }
 0x139   : > { %v1360_v52 = vpack.c.bf16 %v1357_v50, %v1356_v49  ;;  %v1351_v56 = vpop.f32.mrf.mxu1  ;;  %v3959_v49 = vld [vmem:[#allocation12 + $0xb4] sm:$0xf0]  ;;  %v3465_v50 = vld [vmem:[#allocation12 + $0x160] sm:$0xf]  ;;  %1964 = vmatpush.bf16.msra.mxu3 %v3314_v48  ;;  %v3425_v48 = vld [vmem:[#allocation12 + $0x110] sm:$0xf] }
 0x13a   : > { %v1332_v55 = vpop.f32.mrf.mxu0  ;;  %v3466_v54 = vor.u32 %v3981_v51, %v3465_v50  ;;  %v3489_v50 = vld [vmem:[#allocation12 + $0x190] sm:$0xf] }
 0x13b   : > { %v1333_v63 = vadd.f32 %v1332_v55, %v1314_v58  ;;  %v3529_v55 = vld [vmem:[#allocation12 + $0x1e0] sm:$0xf] }
 0x13c   : > { %1989 = vmatpush.bf16.msrb.mxu1 %v3466_v54  ;;  %v3585_v54 = vld [vmem:[#allocation12 + $0x250] sm:$0xf] }
 0x13d   : > { %v1352_v3 = vadd.f32 %v1351_v56, %v1333_v63  ;;  %v3997_v56 = vld [vmem:[#allocation12 + $0x1e4] sm:$0xf0]  ;;  %v3370_v63 = vor.u32 %v3957_v61, %v3369_v60  ;;  %1965 = vmatpush.bf16.msra.mxu3 %v3306_v62  ;;  %v3417_v62 = vld [vmem:[#allocation12 + $0x100] sm:$0xf] }
 0x13e   : > { %v3530_v58 = vor.u32 %v3997_v56, %v3529_v55  ;;  %v4011_v55 = vld [vmem:[#allocation12 + $0x254] sm:$0xf0] }
 0x13f   : > { %v1358_v53 = vmax.f32 %v1257_v11, %v1352_v3  ;;  %v3995_v3 = vld [vmem:[#allocation12 + $0x1d4] sm:$0xf0]  ;;  %v3513_v11 = vld [vmem:[#allocation12 + $0x1c0] sm:$0xf]  ;;  %v3586_v57 = vor.u32 %v4011_v55, %v3585_v54  ;;  %v3451_v54 = vld [vmem:[#allocation12 + $0x148] sm:$0xf0] }
 0x141   : > { %v1353_v44 = vpop.f32.mrf.mxu1  ;;  %1966 = vmatpush.bf16.msra.mxu3 %v3298_v33  ;;  %v3323_v33 = vld [vmem:[#allocation12 + $0x48] sm:$0xf0] }
 0x142   : > { %v1334_v1 = vpop.f32.mrf.mxu0 }
 0x143   : > { %v1335_v4 = vadd.f32 %v1334_v1, %v1316_v0  ;;  %v3457_v0 = vld [vmem:[#allocation12 + $0x150] sm:$0xf]  ;;  %v3979_v1 = vld [vmem:[#allocation12 + $0x154] sm:$0xf0] }
 0x144   : > { %v3458_v2 = vor.u32 %v3979_v1, %v3457_v0  ;;  %v3481_v0 = vld [vmem:[#allocation12 + $0x180] sm:$0xf] }
 0x145   : > { %v1354_v16 = vadd.f32 %v1353_v44, %v1335_v4  ;;  %v3522_v4 = vor.u32 %v3995_v3, %v3521_v23  ;;  %v3361_v44 = vld [vmem:[#allocation12 + $0x90] sm:$0xf]  ;;  %v3985_v23 = vld [vmem:[#allocation12 + $0x184] sm:$0xf0] }
 0x146   : > { %1990 = vmatpush.bf16.msrb.mxu1 %v3458_v2  ;;  %v3362_v13 = vor.u32 %v3955_v10, %v3361_v44  ;;  %v3577_v2 = vld [vmem:[#allocation12 + $0x240] sm:$0xf]  ;;  %v4009_v3 = vld [vmem:[#allocation12 + $0x244] sm:$0xf0]  ;;  %v3966_v44 = vld [vmem:[#allocation12 + $0xf4] sm:$0xf]  ;;  %v3326_v10 = vor.u32 %v3944_v6, %v3323_v33 }
 0x147   : > { %v1359_v17 = vmax.f32 %v1259_v15, %v1354_v16  ;;  %v3993_v15 = vld [vmem:[#allocation12 + $0x1c4] sm:$0xf0]  ;;  %v3450_v16 = vor.u32 %v3977_v9, %v3449_v12  ;;  %v3578_v5 = vor.u32 %v4009_v3, %v3577_v2  ;;  %v3411_v12 = vld [vmem:[#allocation12 + $0xf8] sm:$0xf0] }
 0x148   : > { %v3514_v7 = vor.u32 %v3993_v15, %v3513_v11  ;;  %v3475_v9 = vld [vmem:[#allocation12 + $0x178] sm:$0xf0]  ;;  %v3414_v11 = vor.u32 %v3966_v44, %v3411_v12  ;;  %v3371_v12 = vld [vmem:[#allocation12 + $0xa8] sm:$0xf0] }
 0x149   : > { %v1361_v22 = vpack.c.bf16 %v1359_v17, %v1358_v53  ;;  %v3290_v53 = vor.u32 %v3937_v14, %v3289_v36  ;;  %v3953_v17 = vld [vmem:[#allocation12 + $0x84] sm:$0xf0]  ;;  %v3942_v36 = vld [vmem:[#allocation12 + $0x34] sm:$0xf]  ;;  %v3379_v3 = vld [vmem:[#allocation12 + $0xb8] sm:$0xf0] }
 0x14a   : > { %1991 = vmatpush.bf16.msrb.mxu1 %v3450_v16  ;;  %v3569_v16 = vld [vmem:[#allocation12 + $0x230] sm:$0xf] }
 0x14b   : > { %v1385_v25 = vsel %vm1383_vm0, %v1361_v22, 0  ;;  %v3975_v22 = vld [vmem:[#allocation12 + $0x134] sm:$0xf0]  ;;  %1967 = vmatpush.bf16.msra.mxu3 %v3290_v53  ;;  %v3964_v53 = vld [vmem:[#allocation12 + $0xe4] sm:$0xf] }
 0x14c   : > { %1393 = vmatpush.bf16.msra.mxu2 %v1385_v25  ;;  %v3354_v25 = vor.u32 %v3953_v17, %v3353_v20  ;;  %v3315_v20 = vld [vmem:[#allocation12 + $0x38] sm:$0xf0]  ;;  %v3403_v17 = vld [vmem:[#allocation12 + $0xe8] sm:$0xf0] }
 0x14f   : > { %2016 = vmatpush.bf16.msrb.mxu3 %v3602_v34 }
 0x150   : > { %1394 = vmatpush.bf16.msra.mxu2 %v1360_v52  ;;  %v3378_v52 = vor.u32 %v3959_v49, %v3377_v47  ;;  %v3342_v47 = vor.u32 %v3948_v45, %v3339_v46  ;;  %v3971_v49 = vld [vmem:[#allocation12 + $0x114] sm:$0xf0]  ;;  %v3938_v46 = vld [vmem:[#allocation12 + $0x14] sm:$0xf] }
 0x151   : > { %v3426_v51 = vor.u32 %v3971_v49, %v3425_v48  ;;  %v4003_v45 = vld [vmem:[#allocation12 + $0x214] sm:$0xf0]  ;;  %v3387_v49 = vld [vmem:[#allocation12 + $0xc8] sm:$0xf0] }
 0x152   : > { %1978 = vmatpush.bf16.msrb.mxu0 %v3378_v52  ;;  %v3987_v52 = vld [vmem:[#allocation12 + $0x194] sm:$0xf0] }
 0x153   : > { %3265 = vmatmul.msk.bf16.vlgmr.msra.gmra.mxu2 %vm1376_vm1, %v3929_v27  ;;  %v3442_v27 = vor.u32 %v3975_v22, %v3441_v21  ;;  %v3490_v56 = vor.u32 %v3987_v52, %v3489_v50  ;;  %v3318_v21 = vor.u32 %v3942_v36, %v3315_v20  ;;  %v3406_v22 = vor.u32 %v3964_v53, %v3403_v17  ;;  %v3976_v50 = vld [vmem:[#allocation12 + $0x144] sm:$0xf]  ;;  %v3970_v36 = vld [vmem:[#allocation12 + $0x114] sm:$0xf] }
 0x154   : > { %2002 = vmatpush.bf16.msrb.mxu2 %v3538_v26  ;;  %v3594_v26 = vor.u32 %v4013_v42, %v3593_v18  ;;  %v3459_v18 = vld [vmem:[#allocation12 + $0x158] sm:$0xf0]  ;;  %v3553_v42 = vld [vmem:[#allocation12 + $0x210] sm:$0xf]  ;;  %v3952_v17 = vld [vmem:[#allocation12 + $0x84] sm:$0xf] }
 0x155   : > { %1992 = vmatpush.bf16.msrb.mxu1 %v3442_v27  ;;  %v3467_v27 = vld [vmem:[#allocation12 + $0x168] sm:$0xf0]  ;;  %v3554_v48 = vor.u32 %v4003_v45, %v3553_v42 }
 0x156   : > { %1979 = vmatpush.bf16.msrb.mxu0 %v3370_v63  ;;  %2017 = vmatpush.bf16.msrb.mxu3 %v3594_v26  ;;  %v3969_v63 = vld [vmem:[#allocation12 + $0x104] sm:$0xf0]  ;;  %v3462_v26 = vor.u32 %v3978_v41, %v3459_v18 }
 0x157   : > { %v3418_v1 = vor.u32 %v3969_v63, %v3417_v62  ;;  %v3936_v62 = vld [vmem:[#allocation12 + $0x4] sm:$0xf] }
 0x158   : > { %2003 = vmatpush.bf16.msrb.mxu2 %v3530_v58  ;;  %v3946_v58 = vld [vmem:[#allocation12 + $0x54] sm:$0xf] }
 0x159   : > { %1993 = vmatpush.bf16.msrb.mxu1 %v3434_v40  ;;  %v3334_v60 = vor.u32 %v3946_v58, %v3331_v59  ;;  %v3398_v40 = vor.u32 %v3962_v38, %v3395_v39  ;;  %v3545_v59 = vld [vmem:[#allocation12 + $0x200] sm:$0xf] }
 0x15a   : > { %1980 = vmatpush.bf16.msrb.mxu0 %v3362_v13  ;;  %2018 = vmatpush.bf16.msrb.mxu3 %v3586_v57  ;;  %v3982_v13 = vld [vmem:[#allocation12 + $0x174] sm:$0xf] }
 0x15b   : > { %v3478_v15 = vor.u32 %v3982_v13, %v3475_v9  ;;  %v3972_v9 = vld [vmem:[#allocation12 + $0x124] sm:$0xf] }
 0x15c   : > { %2004 = vmatpush.bf16.msrb.mxu2 %v3522_v4  ;;  %v3482_v4 = vor.u32 %v3985_v23, %v3481_v0  ;;  %v3958_v23 = vld [vmem:[#allocation12 + $0xb4] sm:$0xf] }
 0x15d   : > { %1994 = vmatpush.bf16.msrb.mxu1 %v3426_v51  ;;  %v3382_v33 = vor.u32 %v3958_v23, %v3379_v3  ;;  %v3994_v3 = vld [vmem:[#allocation12 + $0x1d4] sm:$0xf] }
 0x15e   : > { %1981 = vmatpush.bf16.msrb.mxu0 %v3354_v25  ;;  %2019 = vmatpush.bf16.msrb.mxu3 %v3578_v5  ;;  %v3980_v25 = vld [vmem:[#allocation12 + $0x164] sm:$0xf]  ;;  %v3443_v5 = vld [vmem:[#allocation12 + $0x138] sm:$0xf0] }
 0x160   : > { %2005 = vmatpush.bf16.msrb.mxu2 %v3514_v7  ;;  %v4007_v7 = vld [vmem:[#allocation12 + $0x234] sm:$0xf0] }
 0x161   : > { %1995 = vmatpush.bf16.msrb.mxu1 %v3418_v1  ;;  %v3570_v14 = vor.u32 %v4007_v7, %v3569_v16  ;;  %v3291_v1 = vld [vmem:[#allocation12 + $0x8] sm:$0xf0]  ;;  %v3954_v16 = vld [vmem:[#allocation12 + $0x94] sm:$0xf]  ;;  %v3363_v7 = vld [vmem:[#allocation12 + $0x98] sm:$0xf0] }
 0x162   : > { %2030 = vmatpush.bf16.msra.mxu0 %v3350_v35  ;;  %v3307_v35 = vld [vmem:[#allocation12 + $0x28] sm:$0xf0]  ;;  %v3294_v2 = vor.u32 %v3936_v62, %v3291_v1  ;;  %v3366_v20 = vor.u32 %v3954_v16, %v3363_v7  ;;  %v4012_v62 = vld [vmem:[#allocation12 + $0x264] sm:$0xf]  ;;  %v3990_v7 = vld [vmem:[#allocation12 + $0x1b4] sm:$0xf] }
 0x163   : > { %3266 = vmatmul.msk.bf16.gmra.mxu2 %vm1376_vm1, %v3930_v19  ;;  %v3505_v19 = vld [vmem:[#allocation12 + $0x1b0] sm:$0xf]  ;;  %2020 = vmatpush.bf16.msrb.mxu3 %v3570_v14  ;;  %v3310_v8 = vor.u32 %v3940_v31, %v3307_v35  ;;  %v3427_v14 = vld [vmem:[#allocation12 + $0x118] sm:$0xf0] }
 0x164   : > { %v3506_v29 = vor.u32 %v3991_v24, %v3505_v19  ;;  %v4197_v19 = vld [vmem:[#allocation10] ss:$0 sm:$0xff]  ;;  %v3470_v24 = vor.u32 %v3980_v25, %v3467_v27  ;;  %v3430_v53 = vor.u32 %v3970_v36, %v3427_v14  ;;  %v3419_v25 = vld [vmem:[#allocation12 + $0x108] sm:$0xf0] }
 0x165   : > { %2044 = vmatpush.bf16.msra.mxu1 %v3414_v11  ;;  %v3507_v36 = vld [vmem:[#allocation12 + $0x1b8] sm:$0xf0] }
 0x166   : > { %2006 = vmatpush.bf16.msrb.mxu2 %v3506_v29  ;;  %2031 = vmatpush.bf16.msra.mxu0 %v3342_v47  ;;  %v3561_v29 = vld [vmem:[#allocation12 + $0x220] sm:$0xf]  ;;  %v3299_v47 = vld [vmem:[#allocation12 + $0x18] sm:$0xf0] }
 0x167   : > { %v3562_v34 = vor.u32 %v4005_v30, %v3561_v29  ;;  %v3302_v52 = vor.u32 %v3938_v46, %v3299_v47  ;;  %v3998_v46 = vld [vmem:[#allocation12 + $0x1f4] sm:$0xf]  ;;  %v3539_v47 = vld [vmem:[#allocation12 + $0x1f8] sm:$0xf0] }
 0x169   : > { %2045 = vmatpush.bf16.msra.mxu1 %v3406_v22  ;;  %2021 = vmatpush.bf16.msrb.mxu3 %v3562_v34  ;;  %v3968_v22 = vld [vmem:[#allocation12 + $0x104] sm:$0xf] }
 0x16a   : > { %2007 = vmatpush.bf16.msrb.mxu2 %v3498_v43  ;;  %2032 = vmatpush.bf16.msra.mxu0 %v3334_v60  ;;  %v4001_v60 = vld [vmem:[#allocation12 + $0x204] sm:$0xf0]  ;;  %v3422_v29 = vor.u32 %v3968_v22, %v3419_v25  ;;  %v3510_v22 = vor.u32 %v3990_v7, %v3507_v36 }
 0x16b   : > { %v3546_v0 = vor.u32 %v4001_v60, %v3545_v59 }
 0x16d   : > { %2046 = vmatpush.bf16.msra.mxu1 %v3398_v40  ;;  %2022 = vmatpush.bf16.msrb.mxu3 %v3554_v48  ;;  %v4014_v48 = vld [vmem:[#allocation12 + $0x274] sm:$0xf] }
 0x16e   : > { %2008 = vmatpush.bf16.msrb.mxu2 %v3490_v56  ;;  %2033 = vmatpush.bf16.msra.mxu0 %v3326_v10  ;;  %v3454_v56 = vor.u32 %v3976_v50, %v3451_v54  ;;  %v3956_v10 = vld [vmem:[#allocation12 + $0xa4] sm:$0xf] }
 0x16f   : > { %v3374_v11 = vor.u32 %v3956_v10, %v3371_v12  ;;  %v3587_v10 = vld [vmem:[#allocation12 + $0x258] sm:$0xf0] }
 0x171   : > { %2023 = vmatpush.bf16.msrb.mxu3 %v3546_v0 }
 0x172   : > { %2009 = vmatpush.bf16.msrb.mxu2 %v3482_v4  ;;  %2034 = vmatpush.bf16.msra.mxu0 %v3318_v21  ;;  %v3974_v4 = vld [vmem:[#allocation12 + $0x134] sm:$0xf]  ;;  %v3355_v21 = vld [vmem:[#allocation12 + $0x88] sm:$0xf0] }
 0x173   : > { %v3446_v44 = vor.u32 %v3974_v4, %v3443_v5  ;;  %v3523_v4 = vld [vmem:[#allocation12 + $0x1d8] sm:$0xf0] }
 0x174   : > { %v3526_v12 = vor.u32 %v3994_v3, %v3523_v4 }
 0x176   : > { %2058 = vmatpush.bf16.msra.mxu2 %v3478_v15  ;;  %2035 = vmatpush.bf16.msra.mxu0 %v3310_v8 }
 0x17a   : > { %2059 = vmatpush.bf16.msra.mxu2 %v3470_v24  ;;  %2036 = vmatpush.bf16.msra.mxu0 %v3302_v52  ;;  %v3542_v52 = vor.u32 %v3998_v46, %v3539_v47 }
 0x17e   : > { %2060 = vmatpush.bf16.msra.mxu2 %v3462_v26  ;;  %2037 = vmatpush.bf16.msra.mxu0 %v3294_v2 }
 0x182   : > { %2061 = vmatpush.bf16.msra.mxu2 %v3454_v56  ;;  %v3531_v56 = vld [vmem:[#allocation12 + $0x1e8] sm:$0xf0] }
 0x186   : > { %2062 = vmatpush.bf16.msra.mxu2 %v3446_v44  ;;  %v4010_v44 = vld [vmem:[#allocation12 + $0x254] sm:$0xf] }
 0x1d6   : > { %v5275_v37 = vpop.f32.mrf.mxu2 }
 0x1de   : > { %v5277_v61 = vpop.f32.mrf.mxu2 }
 0x1e6   : > { %v1401_v28 = vpop.f32.mrf.mxu2 }
 0x1e7   : > { %v1406_v32 = vmax.f32 %v5275_v37, %v1401_v28  ;;  %v3960_v37 = vld [vmem:[#allocation12 + $0xc4] sm:$0xf]  ;;  %v3358_v28 = vor.u32 %v3952_v17, %v3355_v21  ;;  %v4006_v17 = vld [vmem:[#allocation12 + $0x234] sm:$0xf]  ;;  %v3571_v21 = vld [vmem:[#allocation12 + $0x238] sm:$0xf0] }
 0x1e8   : > { %v3390_v55 = vor.u32 %v3960_v37, %v3387_v49  ;;  %v3603_v37 = vld [vmem:[#allocation12 + $0x278] sm:$0xf0]  ;;  %v3996_v49 = vld [vmem:[#allocation12 + $0x1e4] sm:$0xf] }
 0x1e9   : > { %v1412_v43 = vadd.f32 %v4197_v19, %v1406_v32  ;;  %v3534_v1 = vor.u32 %v3996_v49, %v3531_v56 }
 0x1ea   : > { %2047 = vmatpush.bf16.msra.mxu1 %v3390_v55 }
 0x1eb   : > { %v1414_v51 = vmax.f32 %v1412_v43, 0.0 }
 0x1ed   : > { %1416 = vst [vmem:[#allocation3] sm:$0xff] %v1414_v51  ;;  %v1420_v57 = vpack.c.bf16 %v1414_v51, %v1414_v51 }
 0x1ee   : > { %v1403_v58 = vpop.f32.mrf.mxu2  ;;  %2048 = vmatpush.bf16.msra.mxu1 %v3382_v33 }
 0x1ef   : > { %1422 = vst [vmem:[#allocation4] sm:$0xf] %v1420_v57  ;;  %v1407_v63 = vmax.f32 %v5277_v61, %v1403_v58  ;;  %v3435_v61 = vld [vmem:[#allocation12 + $0x128] sm:$0xf0]  ;;  %v3606_v58 = vor.u32 %v4014_v48, %v3603_v37 }
 0x1f0   : > { %v3438_v15 = vor.u32 %v3972_v9, %v3435_v61  ;;  %v3515_v9 = vld [vmem:[#allocation12 + $0x1c8] sm:$0xf0]  ;;  %v3590_v61 = vor.u32 %v4010_v44, %v3587_v10 }
 0x1f1   : > { %v1413_v6 = vadd.f32 %v4197_v19, %v1407_v63  ;;  %v3595_v63 = vld [vmem:[#allocation12 + $0x268] sm:$0xf0] }
 0x1f2   : > { %2049 = vmatpush.bf16.msra.mxu1 %v3374_v11  ;;  %2063 = vmatpush.bf16.msra.mxu2 %v3438_v15  ;;  %v4008_v11 = vld [vmem:[#allocation12 + $0x244] sm:$0xf]  ;;  %v3579_v15 = vld [vmem:[#allocation12 + $0x248] sm:$0xf0] }
 0x1f3   : > { %v1415_v13 = vmax.f32 %v1413_v6, 0.0  ;;  %v3598_v6 = vor.u32 %v4012_v62, %v3595_v63  ;;  %v3582_v14 = vor.u32 %v4008_v11, %v3579_v15 }
 0x1f5   : > { %1417 = vst [vmem:[#allocation3 + $0x8] sm:$0xff] %v1415_v13  ;;  %v3992_v13 = vld [vmem:[#allocation12 + $0x1c4] sm:$0xf] }
 0x1f6   : > { %2050 = vmatpush.bf16.msra.mxu1 %v3366_v20  ;;  %2064 = vmatpush.bf16.msra.mxu2 %v3430_v53  ;;  %v3269_v50 = vld [vmem:[#allocation4] sm:$0xf]  ;;  %v3518_v16 = vor.u32 %v3992_v13, %v3515_v9 }
 0x1fa   : > { %2051 = vmatpush.bf16.msra.mxu1 %v3358_v28  ;;  %2065 = vmatpush.bf16.msra.mxu2 %v3422_v29  ;;  %v4004_v28 = vld [vmem:[#allocation12 + $0x224] sm:$0xf]  ;;  %v3563_v29 = vld [vmem:[#allocation12 + $0x228] sm:$0xf0] }
 0x1fc   : > { %v1419_v27 = vld [vmem:[#allocation3 + $0x8] sm:$0x3]  ;;  %v1431_v35 = vld [vmem:[#allocation3 + $0xa] sm:$0x3]  ;;  %v1443_v42 = vld [vmem:[#allocation3 + $0xc] sm:$0x3] }
 0x1fd   : > { %v1424_v19 = vld [vmem:[#allocation3 + $0x1] sm:$0xff]  ;;  %v1425_v24 = vld [vmem:[#allocation3 + $0x9] sm:$0x3]  ;;  %v1421_v30 = vpack.c.bf16 %v1419_v27, %v1419_v27  ;;  %v1437_v8 = vld [vmem:[#allocation3 + $0xb] sm:$0x3]  ;;  %v1433_v40 = vpack.c.bf16 %v1431_v35, %v1431_v35  ;;  %v1445_v45 = vpack.c.bf16 %v1443_v42, %v1443_v42 }
 0x1fe   : > { %v1426_v31 = vpack.c.bf16 %v1424_v19, %v1424_v19  ;;  %v1427_v32 = vpack.c.bf16 %v1425_v24, %v1425_v24  ;;  %v1430_v34 = vld [vmem:[#allocation3 + $0x2] sm:$0xff]  ;;  %v1439_v43 = vpack.c.bf16 %v1437_v8, %v1437_v8  ;;  %v3988_v27 = vld [vmem:[#allocation12 + $0x1a4] sm:$0xf]  ;;  %v3574_v24 = vor.u32 %v4006_v17, %v3571_v21  ;;  %v4002_v35 = vld [vmem:[#allocation12 + $0x214] sm:$0xf] }
 0x1ff   : > { %v1436_v38 = vld [vmem:[#allocation3 + $0x3] sm:$0xff]  ;;  %v1432_v39 = vpack.c.bf16 %v1430_v34, %v1430_v34  ;;  %1423 = vst [vmem:[#allocation4 + $0x14] sm:$0x1] %v1421_v30  ;;  %v3566_v34 = vor.u32 %v4004_v28, %v3563_v29  ;;  %v3984_v8 = vld [vmem:[#allocation12 + $0x184] sm:$0xf]  ;;  %v4020_v28 = vld [vmem:[#allocation15 + $0x18] sm:$0xff] }
 0x200   : > { %v1442_v41 = vld [vmem:[#allocation3 + $0x4] sm:$0xff]  ;;  %1428 = vst [vmem:[#allocation4 + $0x4] sm:$0xf] %v1426_v31  ;;  %v1438_v18 = vpack.c.bf16 %v1436_v38, %v1436_v38  ;;  %v3555_v38 = vld [vmem:[#allocation12 + $0x218] sm:$0xf0] }
 0x201   : > { %1429 = vst [vmem:[#allocation4 + $0x18] sm:$0x1] %v1427_v32  ;;  %v1444_v26 = vpack.c.bf16 %v1442_v41, %v1442_v41  ;;  %v3499_v19 = vld [vmem:[#allocation12 + $0x1a8] sm:$0xf0]  ;;  %v3986_v31 = vld [vmem:[#allocation12 + $0x194] sm:$0xf]  ;;  %v3558_v41 = vor.u32 %v4002_v35, %v3555_v38 }
 0x202   : > { %1434 = vst [vmem:[#allocation4 + $0x8] sm:$0xf] %v1432_v39  ;;  %v3502_v30 = vor.u32 %v3988_v27, %v3499_v19  ;;  %v3491_v32 = vld [vmem:[#allocation12 + $0x198] sm:$0xf0]  ;;  %v3547_v42 = vld [vmem:[#allocation12 + $0x208] sm:$0xf0] }
 0x203   : > { %1435 = vst [vmem:[#allocation4 + $0x1c] sm:$0x1] %v1433_v40  ;;  %v3494_v39 = vor.u32 %v3986_v31, %v3491_v32  ;;  %v3483_v40 = vld [vmem:[#allocation12 + $0x188] sm:$0xf0]  ;;  %v4016_v17 = vld [vmem:[%s5383_s5] sm:$0xff]  ;;  %v4032_v27 = vld [vmem:[#allocation15 + $0x78] sm:$0xff] }
 0x204   : > { %1440 = vst [vmem:[#allocation4 + $0xc] sm:$0xf] %v1438_v18  ;;  %v4000_v18 = vld [vmem:[#allocation12 + $0x204] sm:$0xf]  ;;  %v4023_v21 = vld [vmem:[#allocation15 + $0x30] sm:$0xff]  ;;  %v4040_v19 = vld [vmem:[#allocation15 + $0xb8] sm:$0xff] }
 0x205   : > { %1441 = vst [vmem:[#allocation4 + $0x20] sm:$0x1] %v1439_v43  ;;  %v3486_v43 = vor.u32 %v3984_v8, %v3483_v40  ;;  %v4031_v29 = vld [vmem:[#allocation15 + $0x70] sm:$0xff]  ;;  %v4038_v35 = vld [vmem:[#allocation15 + $0xa8] sm:$0xff]  ;;  %v4029_v8 = vld [vmem:[#allocation15 + $0x60] sm:$0xff] }
 0x206   : > { %1446 = vst [vmem:[#allocation4 + $0x10] sm:$0xf] %v1444_v26  ;;  %v3933_v51 = vld [vmem:[#allocation4 + $0x10] sm:$0x10]  ;;  %v3550_v26 = vor.u32 %v4000_v18, %v3547_v42  ;;  %v4047_v31 = vld [vmem:[#allocation15 + $0xf0] sm:$0xff]  ;;  %v4037_v40 = vld [vmem:[#allocation15 + $0xa0] sm:$0xff] }
 0x207   : > { %1447 = vst [vmem:[#allocation4 + $0x24] sm:$0x1] %v1445_v45  ;;  %v3270_v54 = vor.u32 %v3933_v51, %v3269_v50  ;;  %v3931_v55 = vld [vmem:[#allocation4 + $0x4] sm:$0xf]  ;;  %v4019_v32 = vld [vmem:[#allocation15 + $0x10] sm:$0xff]  ;;  %v4046_v38 = vld [vmem:[#allocation15 + $0xe8] sm:$0xff] }
 0x208   : > { %v3271_v57 = vld [vmem:[#allocation4 + $0x14] sm:$0x10]  ;;  %v4056_v18 = vld [vmem:[#allocation15 + $0x138] sm:$0xff]  ;;  %v4045_v42 = vld [vmem:[#allocation15 + $0xe0] sm:$0xff] }
 0x209   : > { %1968 = vmatmul.bf16.vlgmr.msra.gmra.mxu3 %v3270_v54  ;;  %v3274_v59 = vor.u32 %v3931_v55, %v3271_v57  ;;  %v3277_v60 = vld [vmem:[#allocation4 + $0x8] sm:$0xf] }
 0x20a   : > { %v3934_v0 = vld [vmem:[#allocation4 + $0x18] sm:$0x10]  ;;  %2072 = vmatpush.bf16.msra.mxu3 %v3542_v52  ;;  %v4024_v55 = vld [vmem:[#allocation15 + $0x38] sm:$0xff] }
 0x20b   : > { %1982 = vmatmul.bf16.vlgmr.msrb.gmra.mxu0 %v3274_v59  ;;  %v3278_v23 = vor.u32 %v3934_v0, %v3277_v60  ;;  %v3932_v2 = vld [vmem:[#allocation4 + $0xc] sm:$0xf] }
 0x20c   : > { %v3279_v5 = vld [vmem:[#allocation4 + $0x1c] sm:$0x10]  ;;  %2086 = vmatpush.bf16.msrb.mxu0 %v3606_v58 }
 0x20d   : > { %1996 = vmatmul.bf16.vlgmr.msrb.gmra.mxu1 %v3278_v23  ;;  %v3282_v33 = vor.u32 %v3932_v2, %v3279_v5  ;;  %v3285_v20 = vld [vmem:[#allocation4 + $0x10] sm:$0xf] }
 0x20e   : > { %2073 = vmatpush.bf16.msra.mxu3 %v3534_v1  ;;  %v3935_v53 = vld [vmem:[#allocation4 + $0x20] sm:$0x10] }
 0x20f   : > { %2010 = vmatmul.bf16.vlgmr.msrb.gmra.mxu2 %v3282_v33  ;;  %v3286_v25 = vor.u32 %v3935_v53, %v3285_v20 }
 0x210   : > { %2087 = vmatpush.bf16.msrb.mxu0 %v3598_v6  ;;  %2502 = vmatpush.bf16.msrb.mxu2 %v4024_v55  ;;  %v4026_v55 = vld [vmem:[#allocation15 + $0x48] sm:$0xff] }
 0x212   : > { %2074 = vmatpush.bf16.msra.mxu3 %v3526_v12 }
 0x214   : > { %2088 = vmatpush.bf16.msrb.mxu0 %v3590_v61  ;;  %2503 = vmatpush.bf16.msrb.mxu2 %v4023_v21 }
 0x216   : > { %2075 = vmatpush.bf16.msra.mxu3 %v3518_v16 }
 0x218   : > { %2089 = vmatpush.bf16.msrb.mxu0 %v3582_v14 }
 0x219   : > { %2024 = vmatmul.bf16.vlgmr.msrb.gmra.mxu3 %v3286_v25 }
 0x21a   : > { %2076 = vmatpush.bf16.msra.mxu3 %v3510_v22  ;;  %v4022_v22 = vld [vmem:[#allocation15 + $0x28] sm:$0xff] }
 0x21b   : > { %2038 = vmatmul.bf16.vlgmr.msra.gmra.mxu0 %v3270_v54  ;;  %2504 = vmatpush.bf16.msrb.mxu2 %v4022_v22  ;;  %v4049_v22 = vld [vmem:[#allocation15 + $0x100] sm:$0xff] }
 0x21c   : > { %2090 = vmatpush.bf16.msrb.mxu0 %v3574_v24  ;;  %v4048_v24 = vld [vmem:[#allocation15 + $0xf8] sm:$0xff] }
 0x21d   : > { %2052 = vmatmul.bf16.vlgmr.msra.gmra.mxu1 %v3274_v59 }
 0x21e   : > { %2077 = vmatpush.bf16.msra.mxu3 %v3502_v30  ;;  %v4039_v30 = vld [vmem:[#allocation15 + $0xb0] sm:$0xff] }
 0x21f   : > { %2066 = vmatmul.bf16.vlgmr.msra.gmra.mxu2 %v3278_v23 }
 0x220   : > { %2091 = vmatpush.bf16.msrb.mxu0 %v3566_v34  ;;  %v4030_v34 = vld [vmem:[#allocation15 + $0x68] sm:$0xff] }
 0x222   : > { %2078 = vmatpush.bf16.msra.mxu3 %v3494_v39  ;;  %v4018_v39 = vld [vmem:[#allocation15 + $0x8] sm:$0xff] }
 0x224   : > { %2092 = vmatpush.bf16.msrb.mxu0 %v3558_v41  ;;  %v4017_v41 = vld [vmem:[#allocation15] sm:$0xff] }
 0x226   : > { %2079 = vmatpush.bf16.msra.mxu3 %v3486_v43  ;;  %v4028_v43 = vld [vmem:[#allocation15 + $0x58] sm:$0xff] }
 0x228   : > { %2093 = vmatpush.bf16.msrb.mxu0 %v3550_v26 }
 0x229   : > { %2080 = vmatmul.bf16.vlgmr.msra.gmra.mxu3 %v3282_v33 }
 0x22a   : > { %2515 = vmatpush.bf16.msrb.mxu3 %v4032_v27  ;;  %v4063_v27 = vld [vmem:[%s5387_s9 + $0x30] sm:$0xff] }
 0x22b   : > { %2094 = vmatmul.bf16.vlgmr.msrb.gmra.mxu0 %v3286_v25  ;;  %v4021_v25 = vld [vmem:[#allocation15 + $0x20] sm:$0xff] }
 0x22c   : > { %2505 = vmatpush.bf16.msrb.mxu2 %v4021_v25  ;;  %2541 = vmatpush.bf16.msra.mxu0 %v4048_v24  ;;  %v4064_v25 = vld [vmem:[%s5387_s9 + $0x38] sm:$0xff] }
 0x22e   : > { %2516 = vmatpush.bf16.msrb.mxu3 %v4031_v29 }
 0x230   : > { %2506 = vmatpush.bf16.msrb.mxu2 %v4020_v28  ;;  %2542 = vmatpush.bf16.msra.mxu0 %v4047_v31 }
 0x232   : > { %2517 = vmatpush.bf16.msrb.mxu3 %v4030_v34  ;;  %v4061_v34 = vld [vmem:[%s5387_s9 + $0x20] sm:$0xff] }
 0x234   : > { %2507 = vmatpush.bf16.msrb.mxu2 %v4019_v32  ;;  %2543 = vmatpush.bf16.msra.mxu0 %v4046_v38  ;;  %v4062_v32 = vld [vmem:[%s5387_s9 + $0x28] sm:$0xff]  ;;  %v4059_v38 = vld [vmem:[%s5387_s9 + $0x10] sm:$0xff] }
 0x236   : > { %2518 = vmatpush.bf16.msrb.mxu3 %v4029_v8  ;;  %v4057_v8 = vld [vmem:[%s5387_s9] sm:$0xff] }
 0x238   : > { %2508 = vmatpush.bf16.msrb.mxu2 %v4018_v39  ;;  %2544 = vmatpush.bf16.msra.mxu0 %v4045_v42  ;;  %v4058_v39 = vld [vmem:[%s5387_s9 + $0x8] sm:$0xff] }
 0x23a   : > { %2519 = vmatpush.bf16.msrb.mxu3 %v4028_v43  ;;  %v4070_v43 = vld [vmem:[%s5389_s11 + $0x28] sm:$0xff] }
 0x23c   : > { %2509 = vmatpush.bf16.msrb.mxu2 %v4017_v41  ;;  %v4071_v41 = vld [vmem:[%s5389_s11 + $0x30] sm:$0xff] }
 0x240   : > { %2554 = vmatpush.bf16.msra.mxu2 %v4056_v18 }
 0x288   : > { %v1983_v45 = vpop.f32.mrf.mxu0 }
 0x28a   : > { %v1997_v47 = vpop.f32.mrf.mxu1 }
 0x28c   : > { %v1969_v46 = vpop.f32.mrf.mxu3 }
 0x28d   : > { %v1984_v63 = vadd.f32 %v1983_v45, %v1969_v46  ;;  %v4036_v45 = vld [vmem:[#allocation15 + $0x98] sm:$0xff] }
 0x28e   : > { %v4044_v46 = vld [vmem:[#allocation15 + $0xd8] sm:$0xff] }
 0x28f   : > { %v1998_v4 = vadd.f32 %v1997_v47, %v1984_v63  ;;  %v4055_v47 = vld [vmem:[#allocation15 + $0x130] sm:$0xff]  ;;  %2545 = vmatpush.bf16.msra.mxu0 %v4044_v46  ;;  %v4033_v63 = vld [vmem:[#allocation15 + $0x80] sm:$0xff] }
 0x290   : > { %v1985_v48 = vpop.f32.mrf.mxu0  ;;  %2555 = vmatpush.bf16.msra.mxu2 %v4055_v47  ;;  %v4069_v47 = vld [vmem:[%s5389_s11 + $0x20] sm:$0xff] }
 0x292   : > { %v2011_v37 = vpop.f32.mrf.mxu2  ;;  %v1999_v51 = vpop.f32.mrf.mxu1 }
 0x293   : > { %v2012_v12 = vadd.f32 %v2011_v37, %v1998_v4  ;;  %v4035_v37 = vld [vmem:[#allocation15 + $0x90] sm:$0xff]  ;;  %v2150_v4 = vld [vmem:[#allocation6 + $0x1] sm:$0x1] }
 0x294   : > { %v1971_v49 = vpop.f32.mrf.mxu3 }
 0x295   : > { %v1986_v0 = vadd.f32 %v1985_v48, %v1971_v49  ;;  %v4027_v48 = vld [vmem:[#allocation15 + $0x50] sm:$0xff] }
 0x296   : > { %v4043_v49 = vld [vmem:[#allocation15 + $0xd0] sm:$0xff]  ;;  %2520 = vmatpush.bf16.msrb.mxu3 %v4027_v48 }
 0x297   : > { %v2000_v5 = vadd.f32 %v1999_v51, %v1986_v0  ;;  %v4054_v51 = vld [vmem:[#allocation15 + $0x128] sm:$0xff]  ;;  %2546 = vmatpush.bf16.msra.mxu0 %v4043_v49  ;;  %v4041_v0 = vld [vmem:[#allocation15 + $0xc0] sm:$0xff] }
 0x298   : > { %v2039_v50 = vpop.f32.mrf.mxu0  ;;  %2556 = vmatpush.bf16.msra.mxu2 %v4054_v51 }
 0x29a   : > { %v2013_v52 = vpop.f32.mrf.mxu2  ;;  %v2053_v57 = vpop.f32.mrf.mxu1  ;;  %2521 = vmatpush.bf16.msrb.mxu3 %v4026_v55  ;;  %v4067_v55 = vld [vmem:[%s5389_s11 + $0x10] sm:$0xff] }
 0x29b   : > { %v2054_v1 = vadd.f32 %v2053_v57, %v2039_v50  ;;  %v2014_v13 = vadd.f32 %v2013_v52, %v2000_v5  ;;  %v4198_v50 = vld [vmem:[#allocation13] ss:$0 sm:$0xff]  ;;  %v4042_v57 = vld [vmem:[#allocation15 + $0xc8] sm:$0xff] }
 0x29c   : > { %v2025_v54 = vpop.f32.mrf.mxu3  ;;  %2547 = vmatpush.bf16.msra.mxu0 %v4042_v57  ;;  %v2155_v5 = vld [vmem:[#allocation6 + $0x2] sm:$0x1] }
 0x29d   : > { %v2026_v15 = vadd.f32 %v2025_v54, %v2012_v12 }
 0x2a0   : > { %v2041_v56 = vpop.f32.mrf.mxu0  ;;  %2548 = vmatpush.bf16.msra.mxu0 %v4041_v0  ;;  %v4066_v0 = vld [vmem:[%s5389_s11 + $0x8] sm:$0xff] }
 0x2a2   : > { %v2067_v59 = vpop.f32.mrf.mxu2  ;;  %v2055_v23 = vpop.f32.mrf.mxu1 }
 0x2a3   : > { %v2068_v2 = vadd.f32 %v2067_v59, %v2054_v1  ;;  %v2056_v6 = vadd.f32 %v2055_v23, %v2041_v56  ;;  %v4034_v56 = vld [vmem:[#allocation15 + $0x88] sm:$0xff]  ;;  %v4053_v59 = vld [vmem:[#allocation15 + $0x120] sm:$0xff]  ;;  %v4052_v1 = vld [vmem:[#allocation15 + $0x118] sm:$0xff] }
 0x2a4   : > { %v2027_v58 = vpop.f32.mrf.mxu3  ;;  %2557 = vmatpush.bf16.msra.mxu2 %v4053_v59  ;;  %v4051_v23 = vld [vmem:[#allocation15 + $0x110] sm:$0xff] }
 0x2a5   : > { %v2028_v16 = vadd.f32 %v2027_v58, %v2014_v13 }
 0x2a8   : > { %v2095_v60 = vpop.f32.mrf.mxu0  ;;  %2558 = vmatpush.bf16.msra.mxu2 %v4052_v1  ;;  %v4065_v1 = vld [vmem:[%s5389_s11] sm:$0xff] }
 0x2aa   : > { %v2069_v3 = vpop.f32.mrf.mxu2 }
 0x2ab   : > { %v2070_v44 = vadd.f32 %v2069_v3, %v2056_v6  ;;  %v2145_v3 = vld [vmem:[#allocation6] sm:$0x1]  ;;  %v2160_v6 = vld [vmem:[#allocation6 + $0x3] sm:$0x1] }
 0x2ac   : > { %v2081_v62 = vpop.f32.mrf.mxu3  ;;  %2559 = vmatpush.bf16.msra.mxu2 %v4051_v23  ;;  %v2585_v23 = vld [vmem:[#allocation18] sm:$0x1] }
 0x2ad   : > { %v2082_v33 = vadd.f32 %v2081_v62, %v2068_v2  ;;  %v4025_v62 = vld [vmem:[#allocation15 + $0x40] sm:$0xff] }
 0x2ae   : > { %2522 = vmatpush.bf16.msrb.mxu3 %v4025_v62 }
 0x2af   : > { %v2096_v9 = vadd.f32 %v2095_v60, %v2082_v33 }
 0x2b0   : > { %v2097_v11 = vpop.f32.mrf.mxu0 }
 0x2b1   : > { %v2100_v36 = vmax.f32 %v2026_v15, %v2096_v9  ;;  %v4050_v15 = vld [vmem:[#allocation15 + $0x108] sm:$0xff] }
 0x2b2   : > { %2560 = vmatpush.bf16.msra.mxu2 %v4050_v15  ;;  %2634 = vmatpush.bf16.msra.mxu3 %v4064_v25 }
 0x2b4   : > { %v2083_v10 = vpop.f32.mrf.mxu3 }
 0x2b5   : > { %v2084_v61 = vadd.f32 %v2083_v10, %v2070_v44 }
 0x2b6   : > { %2561 = vmatpush.bf16.msra.mxu2 %v4049_v22  ;;  %2635 = vmatpush.bf16.msra.mxu3 %v4063_v27 }
 0x2b7   : > { %v2098_v7 = vadd.f32 %v2097_v11, %v2084_v61 }
 0x2b9   : > { %v2101_v14 = vmax.f32 %v2028_v16, %v2098_v7 }
 0x2ba   : > { %2636 = vmatpush.bf16.msra.mxu3 %v4062_v32 }
 0x2bb   : > { %v2102_v20 = vpack.c.bf16 %v2101_v14, %v2100_v36  ;;  %v2165_v36 = vld [vmem:[#allocation6 + $0x4] sm:$0x1] }
 0x2bd   : > { %v2116_v53 = vsel %vm2114_vm2, %v2102_v20, 0 }
 0x2be   : > { %2125 = vmatpush.bf16.msrb.mxu1 %v2116_v53  ;;  %2637 = vmatpush.bf16.msra.mxu3 %v4061_v34 }
 0x2c1   : > { %3611 = vmatmul.msk.bf16.vlgmr.msrb.gmra.mxu1 %vm2110_vm3, %v4016_v17 }
 0x2c2   : > { %2528 = vmatpush.bf16.msra.mxu1 %v4040_v19 }
 0x2c6   : > { %2529 = vmatpush.bf16.msra.mxu1 %v4039_v30 }
 0x2ca   : > { %2530 = vmatpush.bf16.msra.mxu1 %v4038_v35  ;;  %v4060_v35 = vld [vmem:[%s5387_s9 + $0x18] sm:$0xff] }
 0x2cb   : > { %2638 = vmatpush.bf16.msra.mxu3 %v4060_v35 }
 0x2ce   : > { %2531 = vmatpush.bf16.msra.mxu1 %v4037_v40  ;;  %v4072_v40 = vld [vmem:[%s5389_s11 + $0x38] sm:$0xff] }
 0x2cf   : > { %2639 = vmatpush.bf16.msra.mxu3 %v4059_v38 }
 0x2d2   : > { %2532 = vmatpush.bf16.msra.mxu1 %v4036_v45 }
 0x2d3   : > { %2640 = vmatpush.bf16.msra.mxu3 %v4058_v39 }
 0x2d6   : > { %2533 = vmatpush.bf16.msra.mxu1 %v4035_v37 }
 0x2d7   : > { %2641 = vmatpush.bf16.msra.mxu3 %v4057_v8 }
 0x2da   : > { %2534 = vmatpush.bf16.msra.mxu1 %v4034_v56 }
 0x2de   : > { %2535 = vmatpush.bf16.msra.mxu1 %v4033_v63 }
 0x2e2   : > { %2714 = vmatpush.bf16.msrb.mxu1 %v4072_v40 }
 0x2e6   : > { %2715 = vmatpush.bf16.msrb.mxu1 %v4071_v41 }
 0x2ea   : > { %2716 = vmatpush.bf16.msrb.mxu1 %v4070_v43 }
 0x2ee   : > { %2717 = vmatpush.bf16.msrb.mxu1 %v4069_v47 }
 0x33e   : > { %v2127_v26 = vpop.f32.mrf.mxu1 }
 0x346   : > { %v2129_v52 = vpop.f32.mrf.mxu1 }
 0x347   : > { %v2132_v54 = vmax.f32 %v2127_v26, %v2129_v52  ;;  %v2249_v26 = vld [vmem:[#allocation16] sm:$0x1] }
 0x349   : > { %v2137_v58 = vadd.f32 %v4198_v50, %v2132_v54  ;;  %v4068_v50 = vld [vmem:[%s5389_s11 + $0x18] sm:$0xff] }
 0x34a   : > { %2718 = vmatpush.bf16.msrb.mxu1 %v4068_v50 }
 0x34b   : > { %v2138_v60 = vmax.f32 %v2137_v58, 0.0 }
 0x34d   : > { %2139 = vst [vmem:[#allocation5] sm:$0xff] %v2138_v60 }
 0x34e   : > { %2719 = vmatpush.bf16.msrb.mxu1 %v4067_v55 }
 0x352   : > { %2720 = vmatpush.bf16.msrb.mxu1 %v4066_v0 }
 0x354   : > { %v2140_v33 = vld [vmem:[#allocation5] sm:$0x1]  ;;  %v2148_v44 = vld [vmem:[#allocation5 + $0x1] sm:$0x1]  ;;  %v2153_v10 = vld [vmem:[#allocation5 + $0x2] sm:$0x1] }
 0x355   : > { %v2141_v12 = vpack.c.bf16 %v2140_v33, %v2140_v33  ;;  %v2149_v13 = vpack.c.bf16 %v2148_v44, %v2148_v44  ;;  %v2154_v9 = vpack.c.bf16 %v2153_v10, %v2153_v10  ;;  %v2158_v61 = vld [vmem:[#allocation5 + $0x3] sm:$0x1]  ;;  %v2163_v11 = vld [vmem:[#allocation5 + $0x4] sm:$0x1]  ;;  %v2665_v33 = vld [vmem:[#allocation19] sm:$0x1] }
 0x356   : > { %v2159_v16 = vpack.c.bf16 %v2158_v61, %v2158_v61  ;;  %v2164_v7 = vpack.c.bf16 %v2163_v11, %v2163_v11  ;;  %2721 = vmatpush.bf16.msrb.mxu1 %v4065_v1 }
 0x357   : > { %v2146_v14 = vsel %vm5284_vm6, %v2141_v12, %v2145_v3  ;;  %v2151_v20 = vsel %vm5284_vm6, %v2149_v13, %v2150_v4  ;;  %v2156_v53 = vsel %vm5284_vm6, %v2154_v9, %v2155_v5 }
 0x358   : > { %2147 = vst [vmem:[#allocation6] sm:$0x1] %v2146_v14  ;;  %v2161_v17 = vsel %vm5284_vm6, %v2159_v16, %v2160_v6  ;;  %v2166_v21 = vsel %vm5284_vm6, %v2164_v7, %v2165_v36 }
 0x359   : > { %2152 = vst [vmem:[#allocation6 + $0x1] sm:$0x1] %v2151_v20 }
 0x35a   : > { %2157 = vst [vmem:[#allocation6 + $0x2] sm:$0x1] %v2156_v53 }
 0x35b   : > { %2162 = vst [vmem:[#allocation6 + $0x3] sm:$0x1] %v2161_v17 }
 0x35c   : > { %2167 = vst [vmem:[#allocation6 + $0x4] sm:$0x1] %v2166_v21 }
 0x363   : > { %v2168_v19 = vld [vmem:[#allocation6] sm:$0x1f] }
 0x364   : > { %2251 = vst [vmem:[#allocation1] ss:$9 sm:$0xff] %v2168_v19 }
 0x36b   : > { %v2252_v24 = vld [vmem:[#allocation1] sm:$0xff]  ;;  %v2253_v28 = vld [vmem:[#allocation1 + $0x9] sm:$0xff]  ;;  %v2254_v29 = vld [vmem:[#allocation1 + $0x12] sm:$0xff] }
 0x36c   : > { %2510 = vmatmul.bf16.vlgmr.msrb.gmra.mxu2 %v2252_v24  ;;  %2523 = vmatmul.bf16.vlgmr.msrb.gmra.mxu3 %v2253_v28  ;;  %v2255_v30 = vld [vmem:[#allocation1 + $0x1b] sm:$0xff]  ;;  %v2256_v31 = vld [vmem:[#allocation1 + $0x24] sm:$0xff] }
 0x36d   : > { %2536 = vmatmul.bf16.vlgmr.msra.gmra.mxu1 %v2254_v29  ;;  %2549 = vmatmul.bf16.vlgmr.msra.gmra.mxu0 %v2255_v30 }
 0x37c   : > { %2562 = vmatmul.bf16.vlgmr.msra.gmra.mxu2 %v2256_v31 }
 0x3ea   : > { %v2537_v18 = vpop.f32.mrf.mxu1  ;;  %v2550_v42 = vpop.f32.mrf.mxu0 }
 0x3ef   : > { %v2511_v45 = vpop.f32.mrf.mxu2  ;;  %v2524_v46 = vpop.f32.mrf.mxu3 }
 0x3f0   : > { %v2512_v48 = vadd.f32 %v2511_v45, %v2249_v26 }
 0x3f2   : > { %v2539_v37 = vpop.f32.mrf.mxu1  ;;  %v2552_v49 = vpop.f32.mrf.mxu0  ;;  %v2525_v51 = vadd.f32 %v2524_v46, %v2512_v48 }
 0x3f4   : > { %v2538_v56 = vadd.f32 %v2537_v18, %v2525_v51 }
 0x3f6   : > { %v2551_v57 = vadd.f32 %v2550_v42, %v2538_v56 }
 0x3f7   : > { %v2513_v52 = vpop.f32.mrf.mxu2  ;;  %v2526_v54 = vpop.f32.mrf.mxu3 }
 0x3ff   : > { %v2563_v58 = vpop.f32.mrf.mxu2 }
 0x400   : > { %v2564_v59 = vadd.f32 %v2563_v58, %v2551_v57 }
 0x402   : > { %v2567_v60 = vmax.f32 %v2564_v59, 0.0 }
 0x404   : > { %v2568_v62 = vpack.c.bf16 %v2567_v60, %v2567_v60 }
 0x406   : > { %2642 = vmatmul.bf16.vlgmr.msra.gmra.mxu3 %v2568_v62 }
 0x407   : > { %v2565_v63 = vpop.f32.mrf.mxu2 }
 0x489   : > { %v2643_v2 = vpop.f32.mrf.mxu3 }
 0x48a   : > { %v2644_v3 = vadd.f32 %v2643_v2, %v2585_v23 }
 0x48c   : > { %v2647_v4 = vmax.f32 %v2644_v3, 0.0 }
 0x48e   : > { %v2648_v5 = vpack.c.bf16 %v2647_v4, %v2647_v4 }
 0x490   : > { %2722 = vmatmul.bf16.vlgmr.msrb.gmra.mxu1 %v2648_v5 }
 0x491   : > { %v2645_v6 = vpop.f32.mrf.mxu3 }
 0x50d   : > { %v2723_v44 = vpop.f32.mrf.mxu1 }
 0x50e   : > { %v2724_v10 = vadd.f32 %v2723_v44, %v2665_v33 }
 0x510   : > { %2727 = vst [vmem:[%s555_s21] sm:$0x1] %v2724_v10 }
 0x511   : > { %4466 = shalt.err (!%p4463_p8)
}
 0x512   : > { %4105 = dma.vmem_to_hbm [thread:$0]  (%p4643_p5), %s2740_s3, 16, %s2742_s15, %s2729_s22  }
 0x515   : > { %v2725_v12 = vpop.f32.mrf.mxu1 }
 0x516 PF: > { %s5420_s8 = sld [smem:[#allocation28_spill]]  ;;  %p4152_p9 = scmp.ge.s32.totalorder %s4521_s28, 2 }
 0x518   : > { %p4133_p10 = pnand %p4152_p9, %p4647_p6 }
 0x51a   : > { %p4134_p11 = pneg %p4133_p10 }
 0x51c   : > { %s2753_s20 = sand.u32 1, %s5420_s8  }
 0x51d   : > { %s2754_s23 = scalar_lea.sflag [#allocation9], %s2753_s20 }
 0x51e   : > { %4504 = dma.done.wait (%p4134_p11), %s2754_s23, 16  }
 0x51f   : > { %4506 = vsyncadd (%p4134_p11), %s2754_s23, 4294967280  ;;  %s5422_s28 = sld [smem:[#allocation30_spill]]  ;;  %s5425_s25 = smov %s4513_s26 }
 0x520   : > { %s5423_s6 = sld [smem:[#allocation29_spill]] }
 0x521   : > { %s5424_s27 = sld [smem:[#allocation31_spill]] }
 0x525   : > { %p28_p12 = scmp.ge.s32.totalorder %s5422_s28, 4  }
 0x526   : > { %s5426_s26 = smov %s5423_s6 }
 0x527   :  { %30 = sbr.rel (!%p28_p12) target bundleno = 15 (0xf), region = 140 }
 0x52c   :  { %2759 = vsyncpa [#allocation8], 1 }
 0x52d   :  { %2761 = vsyncpa [#allocation8 + $0x1], 1 }
 0x52e   :  { %2762 = vsyncpa [#allocation11], 1 }
 0x52f   :  { %2763 = vsyncpa [#allocation14], 1 }
 0x530   :  { %2764 = vsyncpa [#allocation17], 1 }
 0x531   :  { %2765 = vsyncpa [#allocation20], 1 }
 0x532   :  { %2766 = vsyncpa [#allocation9], 1 }
 0x533   :  { %2768 = vsyncpa [#allocation9 + $0x1], 1 }

</bundles_post_ra>
